<compile_context>
chip_gen: v6e
topology: v6e:2x2x1
jax: 0.10.0
libtpu: 0.0.40
codegen_flags: <defaults>
</compile_context>

<pallas_src>
import functools
import math

import jax
import jax.numpy as jnp
from jax.experimental import pallas as pl
from jax.experimental.pallas import tpu as pltpu


# ------------------------------- small helpers -------------------------------

def _round_up(n, m):
    return ((n + m - 1) // m) * m


@functools.lru_cache(maxsize=None)
def _vmem_limit_bytes():
    # Per-generation scoped-VMEM limit: ~85% of physical VMEM, clamped to a sane
    # range (v5e/v6e: ~108 MiB of 128; v7x: ~54 MiB of 64).
    cap = 64 * 1024 * 1024
    try:
        info = pltpu.get_tpu_info()
        cap = int(getattr(info, "vmem_capacity_bytes", cap))
    except Exception:
        pass
    return max(32 * 1024 * 1024, min(int(cap * 0.85), 112 * 1024 * 1024))


def _pick_rows_per_block(B, T, cap_rows=512):
    """Largest divisor Bb of B such that Bb*T rows satisfy the (8,128) sublane
    rule (or cover the full array) and stay under a VMEM-friendly row cap."""
    divisors = [d for d in range(1, B + 1) if B % d == 0]
    ok = [d for d in divisors if ((d * T) % 8 == 0 or d == B)]
    within = [d for d in ok if d * T <= cap_rows]
    if within:
        return max(within)
    return min(ok) if ok else B


def _layernorm(x, w, b, eps=1e-5):
    # x: (R, E) f32; w, b: (1, E) -> broadcast over rows.  Matches nn.LayerNorm.
    mu = jnp.mean(x, axis=-1, keepdims=True)
    var = jnp.mean((x - mu) * (x - mu), axis=-1, keepdims=True)
    return (x - mu) * jax.lax.rsqrt(var + eps) * w + b


# ---------------------- fused transformer-stack kernel ----------------------

def gpt_blocks_kernel(x_ref, ln1w_ref, ln1b_ref, wqkv_ref, wp_ref, bp_ref,
                      ln2w_ref, ln2b_ref, w1_ref, b1_ref, w2_ref, b2_ref,
                      o_ref, mask_ref, *, seq_len, num_heads, head_size):
    # grid = (batch_block, layer); layer is the inner ("arbitrary") axis.
    layer = pl.program_id(1)
    R, E = o_ref.shape                 # R = Bb * T flattened rows
    T = seq_len
    Bb = R // T
    H, Hs = num_heads, head_size
    HD = H * Hs

    @pl.when(layer == 0)
    def _init():
        # Load this batch block's residual stream into the resident output block
        # (the carry across the layer axis) and precompute the causal mask bias.
        o_ref[...] = x_ref[...]
        r = jax.lax.broadcasted_iota(jnp.int32, (T, T), 0)
        c = jax.lax.broadcasted_iota(jnp.int32, (T, T), 1)
        mask_ref[...] = jnp.where(r >= c, 0.0, -1e30).astype(jnp.float32)

    x = o_ref[...]                                        # (R, E) f32 residual

    # ---- x = x + MultiHeadAttention(LayerNorm(x)) ----
    h = _layernorm(x, ln1w_ref[0], ln1b_ref[0])
    qkv = jnp.dot(h.astype(jnp.bfloat16), wqkv_ref[0],
                  preferred_element_type=jnp.float32)     # (R, 3*HD) one matmul

    # Head split: static lane/sublane slices stacked into a single (Bb*H, T, Hs)
    # batch dim so scores/PV are single-batch-dim rank-3 einsums.
    q_l, k_l, v_l = [], [], []
    for b in range(Bb):
        r0 = b * T
        for hh in range(H):
            c0 = hh * Hs
            q_l.append(qkv[r0:r0 + T, c0:c0 + Hs])
            k_l.append(qkv[r0:r0 + T, HD + c0:HD + c0 + Hs])
            v_l.append(qkv[r0:r0 + T, 2 * HD + c0:2 * HD + c0 + Hs])
    # Fold 1/sqrt(head_size) into q (scales R*HD elems, not H*T^2 scores).
    q = (jnp.stack(q_l, axis=0) * (1.0 / math.sqrt(Hs))).astype(jnp.bfloat16)
    k = jnp.stack(k_l, axis=0).astype(jnp.bfloat16)       # (G, T, Hs), G = Bb*H
    v = jnp.stack(v_l, axis=0).astype(jnp.bfloat16)

    s = jnp.einsum('gtd,gsd->gts', q, k,
                   preferred_element_type=jnp.float32)    # (G, T, T) scores
    s = s + mask_ref[...][None, :, :]                     # precomputed causal bias
    s = s - jnp.max(s, axis=-1, keepdims=True)
    p = jnp.exp(s)
    p = p * pl.reciprocal(jnp.sum(p, axis=-1, keepdims=True), approx=True)
    o = jnp.einsum('gts,gsd->gtd', p.astype(jnp.bfloat16), v,
                   preferred_element_type=jnp.float32)    # (G, T, Hs)

    # Merge heads back to (R, HD): lane concat per row, sublane concat over rows.
    o_cat = jnp.concatenate(
        [jnp.concatenate([o[b * H + hh] for hh in range(H)], axis=-1)
         for b in range(Bb)], axis=0)                     # (R, HD)
    attn = jnp.dot(o_cat.astype(jnp.bfloat16), wp_ref[0],
                   preferred_element_type=jnp.float32) + bp_ref[0]
    x = x + attn

    # ---- x = x + FeedForward(LayerNorm(x)) ----
    h2 = _layernorm(x, ln2w_ref[0], ln2b_ref[0])
    f = jnp.dot(h2.astype(jnp.bfloat16), w1_ref[0],
                preferred_element_type=jnp.float32) + b1_ref[0]
    f = jnp.maximum(f, 0.0)                               # ReLU
    x = x + jnp.dot(f.astype(jnp.bfloat16), w2_ref[0],
                    preferred_element_type=jnp.float32) + b2_ref[0]

    o_ref[...] = x        # carry to next layer; HBM writeback only after last layer


# ----------------------- final LayerNorm + LM head --------------------------

def gpt_head_kernel(x_ref, lnw_ref, lnb_ref, wd_ref, bd_ref, o_ref):
    x = x_ref[...].astype(jnp.float32)                    # (rt, E)
    h = _layernorm(x, lnw_ref[...], lnb_ref[...])         # cheap; recomputed per vocab tile
    logits = jnp.dot(h.astype(jnp.bfloat16), wd_ref[...],
                     preferred_element_type=jnp.float32) + bd_ref[...]
    o_ref[...] = logits.astype(o_ref.dtype)


# ------------------------------ pallas wrappers ------------------------------

def blocks_call(x, w, num_heads, head_size):
    B, T, E = x.shape
    L = w['ln1w'].shape[0]
    HD = num_heads * head_size
    F = w['w1'].shape[-1]

    bb = _pick_rows_per_block(B, T)          # batch rows per grid step
    rt = bb * T                              # flattened rows per block
    x2 = x.reshape(B * T, E)

    kernel = functools.partial(gpt_blocks_kernel, seq_len=T,
                               num_heads=num_heads, head_size=head_size)

    x_map = lambda i, l: (i, 0)      # activation block: resident across the layer axis
    w_map = lambda i, l: (l, 0, 0)   # weight block: streamed (double-buffered) per layer

    grid_spec = pltpu.PrefetchScalarGridSpec(
        num_scalar_prefetch=0,
        grid=(B // bb, L),
        in_specs=[
            pl.BlockSpec((rt, E), x_map),            # x (residual stream, bb rows)
            pl.BlockSpec((1, 1, E), w_map),          # ln1 weight
            pl.BlockSpec((1, 1, E), w_map),          # ln1 bias
            pl.BlockSpec((1, E, 3 * HD), w_map),     # fused Wqkv
            pl.BlockSpec((1, HD, E), w_map),         # attn out-proj W
            pl.BlockSpec((1, 1, E), w_map),          # attn out-proj b
            pl.BlockSpec((1, 1, E), w_map),          # ln2 weight
            pl.BlockSpec((1, 1, E), w_map),          # ln2 bias
            pl.BlockSpec((1, E, F), w_map),          # ffn W1
            pl.BlockSpec((1, 1, F), w_map),          # ffn b1
            pl.BlockSpec((1, F, E), w_map),          # ffn W2
            pl.BlockSpec((1, 1, E), w_map),          # ffn b2
        ],
        out_specs=pl.BlockSpec((rt, E), x_map),      # f32 residual carry / output
        scratch_shapes=[pltpu.VMEM((T, T), jnp.float32)],  # causal additive mask
    )
    out = pl.pallas_call(
        kernel,
        out_shape=jax.ShapeDtypeStruct((B * T, E), x2.dtype),
        grid_spec=grid_spec,
        input_output_aliases={0: 0},                       # residual stream in place
        compiler_params=pltpu.CompilerParams(
            dimension_semantics=("parallel", "arbitrary"),
            vmem_limit_bytes=_vmem_limit_bytes()),
    )(x2, w['ln1w'], w['ln1b'], w['wqkv'], w['wp'], w['bp'],
      w['ln2w'], w['ln2b'], w['w1'], w['b1'], w['w2'], w['b2'])
    return out.reshape(B, T, E)


def final_call(x, lnf_w, lnf_b, wd, bd):
    B, T, E = x.shape
    V = wd.shape[-1]
    rows = B * T
    x2 = x.reshape(rows, E)

    # Fixed row tile; pad ragged row counts instead of blowing up the block.
    rt = min(256, _round_up(rows, 8))
    rows_pad = _round_up(rows, rt)
    if rows_pad != rows:
        x2 = jnp.pad(x2, ((0, rows_pad - rows), (0, 0)))

    # Lane-dense vocab tile (multiple of 128 when V >= 128); pad ragged vocab.
    tv = min(2048, _round_up(V, 128)) if V >= 128 else V
    v_pad = _round_up(V, tv)
    wd_p = wd if v_pad == V else jnp.pad(wd, ((0, 0), (0, v_pad - V)))
    bd_p = bd if v_pad == V else jnp.pad(bd, ((0, 0), (0, v_pad - V)))

    grid_spec = pltpu.PrefetchScalarGridSpec(
        num_scalar_prefetch=0,
        grid=(rows_pad // rt, v_pad // tv),
        in_specs=[
            pl.BlockSpec((rt, E), lambda i, j: (i, 0)),   # activations (resident over j)
            pl.BlockSpec((1, E), lambda i, j: (0, 0)),    # LN weight (resident)
            pl.BlockSpec((1, E), lambda i, j: (0, 0)),    # LN bias (resident)
            pl.BlockSpec((E, tv), lambda i, j: (0, j)),   # vocab-tiled LM-head W stream
            pl.BlockSpec((1, tv), lambda i, j: (0, j)),   # vocab-tiled LM-head b
        ],
        out_specs=pl.BlockSpec((rt, tv), lambda i, j: (i, j)),
    )
    out = pl.pallas_call(
        gpt_head_kernel,
        out_shape=jax.ShapeDtypeStruct((rows_pad, v_pad), jnp.float32),
        grid_spec=grid_spec,
        compiler_params=pltpu.CompilerParams(
            dimension_semantics=("parallel", "arbitrary"),
            vmem_limit_bytes=_vmem_limit_bytes()),
    )(x2, lnf_w, lnf_b, wd_p, bd_p)
    return out[:rows, :V].reshape(B, T, V)


# ------------------------------- parameters ---------------------------------

def init_params(key, vocab_size, embed_size, num_heads, head_size,
                num_layers, block_size):
    E, H, Hs, L = embed_size, num_heads, head_size, num_layers
    HD = H * Hs
    F = 4 * E
    keys = jax.random.split(key, 9)

    def nrm(k, shape, dtype=jnp.float32):
        return (0.02 * jax.random.normal(k, shape, jnp.float32)).astype(dtype)

    # qkv Linears have no bias (matches Head); proj / ffn / lm-head have biases.
    wq = nrm(keys[0], (L, E, HD), jnp.bfloat16)
    wk = nrm(keys[1], (L, E, HD), jnp.bfloat16)
    wv = nrm(keys[2], (L, E, HD), jnp.bfloat16)
    wqkv = jnp.concatenate([wq, wk, wv], axis=-1)          # (L, E, 3*HD)

    return {
        'tok_emb': nrm(keys[3], (vocab_size, E)),
        'pos_emb': nrm(keys[4], (block_size, E)),
        'blk': {
            'ln1w': jnp.ones((L, 1, E), jnp.float32),
            'ln1b': jnp.zeros((L, 1, E), jnp.float32),
            'wqkv': wqkv,
            'wp': nrm(keys[5], (L, HD, E), jnp.bfloat16),
            'bp': jnp.zeros((L, 1, E), jnp.float32),
            'ln2w': jnp.ones((L, 1, E), jnp.float32),
            'ln2b': jnp.zeros((L, 1, E), jnp.float32),
            'w1': nrm(keys[6], (L, E, F), jnp.bfloat16),
            'b1': jnp.zeros((L, 1, F), jnp.float32),
            'w2': nrm(keys[7], (L, F, E), jnp.bfloat16),
            'b2': jnp.zeros((L, 1, E), jnp.float32),
        },
        'lnf_w': jnp.ones((1, E), jnp.float32),
        'lnf_b': jnp.zeros((1, E), jnp.float32),
        'wd': nrm(keys[8], (E, vocab_size), jnp.bfloat16),
        'bd': jnp.zeros((1, vocab_size), jnp.float32),
    }


# --------------------------------- forward ----------------------------------

def gpt_forward(idx, params, *, num_heads, head_size):
    # idx: (B, T) int32 token ids; targets=None path -> loss is None.
    B, T = idx.shape
    tok = jnp.take(params['tok_emb'], idx, axis=0)         # (B, T, E) embedding gather (glue)
    pos = params['pos_emb'][:T]                            # (T, E)
    x = (tok + pos[None, :, :]).astype(jnp.float32)
    x = blocks_call(x, params['blk'], num_heads, head_size)
    logits = final_call(x, params['lnf_w'], params['lnf_b'],
                        params['wd'], params['bd'])
    # TODO(synk): cross-entropy loss path (targets != None) not implemented;
    # forward is exercised with targets=None, matching reference (loss = None).
    return logits, None


# ----------------------------------- main ------------------------------------

if __name__ == "__main__":
    vocab_size = 64
    embed_size = 32
    num_heads = 4
    head_size = 8          # head_size * num_heads == embed_size
    num_layers = 2
    block_size = 8
    batch = 2
    seq_len = 8

    key = jax.random.PRNGKey(0)
    k_param, k_idx = jax.random.split(key)
    params = init_params(k_param, vocab_size, embed_size, num_heads, head_size,
                         num_layers, block_size)
    idx = jax.random.randint(k_idx, (batch, seq_len), 0, vocab_size, dtype=jnp.int32)

    fwd = jax.jit(functools.partial(gpt_forward,
                                    num_heads=num_heads, head_size=head_size))
    logits, loss = fwd(idx, params)
    logits = jax.block_until_ready(logits)

    assert logits.shape == (batch, seq_len, vocab_size)
    assert loss is None
    assert bool(jnp.all(jnp.isfinite(logits)))
    print("KERNEL_OK")
</pallas_src>

<mosaic_0001>
module attributes {stable_mosaic.version = 11 : i64} {
  func.func @gpt_head_kernel(%arg0: i32, %arg1: i32, %arg2: memref<16x32xf32, #tpu.memory_space<vmem>>, %arg3: memref<1x32xf32, #tpu.memory_space<vmem>>, %arg4: memref<1x32xf32, #tpu.memory_space<vmem>>, %arg5: memref<32x64xbf16, #tpu.memory_space<vmem>>, %arg6: memref<1x64xf32, #tpu.memory_space<vmem>>, %arg7: memref<16x64xf32, #tpu.memory_space<vmem>>) attributes {dimension_semantics = [#tpu.dimension_semantics<parallel>, #tpu.dimension_semantics<arbitrary>], iteration_bounds = array<i64: 1, 1>, scalar_prefetch = 0 : i64, scratch_operands = 0 : i64, tpu.core_type = #tpu.core_type<tc>, window_params = [{transform_indices = @transform_0, window_bounds = array<i64: 16, 32>}, {pipeline_mode = #tpu.pipeline_mode<synchronous>, transform_indices = @transform_1, window_bounds = array<i64: 1, 32>}, {pipeline_mode = #tpu.pipeline_mode<synchronous>, transform_indices = @transform_2, window_bounds = array<i64: 1, 32>}, {transform_indices = @transform_3, window_bounds = array<i64: 32, 64>}, {transform_indices = @transform_4, window_bounds = array<i64: 1, 64>}, {transform_indices = @transform_5, window_bounds = array<i64: 16, 64>}]} {
    %c0 = arith.constant 0 : index
    %c0_0 = arith.constant 0 : index
    %0 = vector.load %arg2[%c0, %c0_0] : memref<16x32xf32, #tpu.memory_space<vmem>>, vector<16x32xf32>
    %c0_1 = arith.constant 0 : index
    %c0_2 = arith.constant 0 : index
    %1 = vector.load %arg3[%c0_1, %c0_2] : memref<1x32xf32, #tpu.memory_space<vmem>>, vector<1x32xf32>
    %c0_3 = arith.constant 0 : index
    %c0_4 = arith.constant 0 : index
    %2 = vector.load %arg4[%c0_3, %c0_4] : memref<1x32xf32, #tpu.memory_space<vmem>>, vector<1x32xf32>
    %cst = arith.constant dense<0.000000e+00> : vector<16xf32>
    %3 = vector.multi_reduction <add>, %0, %cst [1] : vector<16x32xf32> to vector<16xf32>
    %4 = vector.shape_cast %3 : vector<16xf32> to vector<16x1xf32>
    %cst_5 = arith.constant 3.200000e+01 : f32
    %5 = vector.broadcast %cst_5 : f32 to vector<16x1xf32>
    %6 = arith.divf %4, %5 : vector<16x1xf32>
    %7 = vector.broadcast %6 : vector<16x1xf32> to vector<16x32xf32>
    %8 = arith.subf %0, %7 : vector<16x32xf32>
    %9 = vector.broadcast %6 : vector<16x1xf32> to vector<16x32xf32>
    %10 = arith.subf %0, %9 : vector<16x32xf32>
    %11 = arith.mulf %8, %10 : vector<16x32xf32>
    %cst_6 = arith.constant dense<0.000000e+00> : vector<16xf32>
    %12 = vector.multi_reduction <add>, %11, %cst_6 [1] : vector<16x32xf32> to vector<16xf32>
    %13 = vector.shape_cast %12 : vector<16xf32> to vector<16x1xf32>
    %cst_7 = arith.constant 3.200000e+01 : f32
    %14 = vector.broadcast %cst_7 : f32 to vector<16x1xf32>
    %15 = arith.divf %13, %14 : vector<16x1xf32>
    %16 = vector.broadcast %6 : vector<16x1xf32> to vector<16x32xf32>
    %17 = arith.subf %0, %16 : vector<16x32xf32>
    %cst_8 = arith.constant 9.99999974E-6 : f32
    %18 = vector.broadcast %cst_8 : f32 to vector<16x1xf32>
    %19 = arith.addf %15, %18 : vector<16x1xf32>
    %20 = math.rsqrt %19 : vector<16x1xf32>
    %21 = vector.broadcast %20 : vector<16x1xf32> to vector<16x32xf32>
    %22 = arith.mulf %17, %21 : vector<16x32xf32>
    %23 = vector.broadcast %1 : vector<1x32xf32> to vector<16x32xf32>
    %24 = arith.mulf %22, %23 : vector<16x32xf32>
    %25 = vector.broadcast %2 : vector<1x32xf32> to vector<16x32xf32>
    %26 = arith.addf %24, %25 : vector<16x32xf32>
    %27 = arith.truncf %26 : vector<16x32xf32> to vector<16x32xbf16>
    %c0_9 = arith.constant 0 : index
    %c0_10 = arith.constant 0 : index
    %28 = vector.load %arg5[%c0_9, %c0_10] : memref<32x64xbf16, #tpu.memory_space<vmem>>, vector<32x64xbf16>
    %cst_11 = arith.constant dense<0.000000e+00> : vector<16x64xf32>
    %29 = tpu.matmul %27, %28, %cst_11 {dimension_numbers = #tpu.dot_dimension_numbers<[1], [0], [0], [1], [0, 0, 1, 1], [], []>} : vector<16x32xbf16>, vector<32x64xbf16>, vector<16x64xf32> -> vector<16x64xf32>
    %c0_12 = arith.constant 0 : index
    %c0_13 = arith.constant 0 : index
    %30 = vector.load %arg6[%c0_12, %c0_13] : memref<1x64xf32, #tpu.memory_space<vmem>>, vector<1x64xf32>
    %31 = vector.broadcast %30 : vector<1x64xf32> to vector<16x64xf32>
    %32 = arith.addf %29, %31 : vector<16x64xf32>
    %c0_14 = arith.constant 0 : index
    %c0_15 = arith.constant 0 : index
    %33 = vector.load %arg7[%c0_14, %c0_15] : memref<16x64xf32, #tpu.memory_space<vmem>>, vector<16x64xf32>
    tpu.vector_store %arg7[%c0_14, %c0_15], %32 {strides = array<i32>} : memref<16x64xf32, #tpu.memory_space<vmem>>, vector<16x64xf32>,
    return
  }
  func.func @transform_0(%arg0: i32, %arg1: i32) -> (i32, i32) {
    %c0_i32 = arith.constant 0 : i32
    %c0_i32_0 = arith.constant 0 : i32
    return %arg0, %c0_i32 : i32, i32
  }
  func.func @transform_1(%arg0: i32, %arg1: i32) -> (i32, i32) {
    %c0_i32 = arith.constant 0 : i32
    %c0_i32_0 = arith.constant 0 : i32
    %c0_i32_1 = arith.constant 0 : i32
    return %c0_i32, %c0_i32_0 : i32, i32
  }
  func.func @transform_2(%arg0: i32, %arg1: i32) -> (i32, i32) {
    %c0_i32 = arith.constant 0 : i32
    %c0_i32_0 = arith.constant 0 : i32
    %c0_i32_1 = arith.constant 0 : i32
    return %c0_i32, %c0_i32_0 : i32, i32
  }
  func.func @transform_3(%arg0: i32, %arg1: i32) -> (i32, i32) {
    %c0_i32 = arith.constant 0 : i32
    %c0_i32_0 = arith.constant 0 : i32
    return %c0_i32, %arg1 : i32, i32
  }
  func.func @transform_4(%arg0: i32, %arg1: i32) -> (i32, i32) {
    %c0_i32 = arith.constant 0 : i32
    %c0_i32_0 = arith.constant 0 : i32
    return %c0_i32, %arg1 : i32, i32
  }
  func.func @transform_5(%arg0: i32, %arg1: i32) -> (i32, i32) {
    %c0_i32 = arith.constant 0 : i32
    return %arg0, %arg1 : i32, i32
  }
}

module attributes {stable_mosaic.version = 11 : i64} {
  func.func @gpt_blocks_kernel(%arg0: i32, %arg1: i32, %arg2: memref<16x32xf32, #tpu.memory_space<vmem>>, %arg3: memref<1x1x32xf32, #tpu.memory_space<vmem>>, %arg4: memref<1x1x32xf32, #tpu.memory_space<vmem>>, %arg5: memref<1x32x96xbf16, #tpu.memory_space<vmem>>, %arg6: memref<1x32x32xbf16, #tpu.memory_space<vmem>>, %arg7: memref<1x1x32xf32, #tpu.memory_space<vmem>>, %arg8: memref<1x1x32xf32, #tpu.memory_space<vmem>>, %arg9: memref<1x1x32xf32, #tpu.memory_space<vmem>>, %arg10: memref<1x32x128xbf16, #tpu.memory_space<vmem>>, %arg11: memref<1x1x128xf32, #tpu.memory_space<vmem>>, %arg12: memref<1x128x32xbf16, #tpu.memory_space<vmem>>, %arg13: memref<1x1x32xf32, #tpu.memory_space<vmem>>, %arg14: memref<16x32xf32, #tpu.memory_space<vmem>>, %arg15: memref<8x8xf32, #tpu.memory_space<vmem>>) attributes {dimension_semantics = [#tpu.dimension_semantics<parallel>, #tpu.dimension_semantics<arbitrary>], iteration_bounds = array<i64: 1, 2>, scalar_prefetch = 0 : i64, scratch_operands = 1 : i64, tpu.core_type = #tpu.core_type<tc>, window_params = [{transform_indices = @transform_0, window_bounds = array<i64: 16, 32>}, {transform_indices = @transform_1, window_bounds = array<i64: 1, 1, 32>}, {transform_indices = @transform_2, window_bounds = array<i64: 1, 1, 32>}, {transform_indices = @transform_3, window_bounds = array<i64: 1, 32, 96>}, {transform_indices = @transform_4, window_bounds = array<i64: 1, 32, 32>}, {transform_indices = @transform_5, window_bounds = array<i64: 1, 1, 32>}, {transform_indices = @transform_6, window_bounds = array<i64: 1, 1, 32>}, {transform_indices = @transform_7, window_bounds = array<i64: 1, 1, 32>}, {transform_indices = @transform_8, window_bounds = array<i64: 1, 32, 128>}, {transform_indices = @transform_9, window_bounds = array<i64: 1, 1, 128>}, {transform_indices = @transform_10, window_bounds = array<i64: 1, 128, 32>}, {transform_indices = @transform_11, window_bounds = array<i64: 1, 1, 32>}, {transform_indices = @transform_12, window_bounds = array<i64: 16, 32>}]} {
    %c0_i32 = arith.constant 0 : i32
    %0 = arith.cmpi eq, %arg1, %c0_i32 : i32
    %1 = arith.extui %0 : i1 to i32
    %c0_i32_0 = arith.constant 0 : i32
    %2 = arith.cmpi ne, %1, %c0_i32_0 : i32
    scf.if %2 {
      %c0_58 = arith.constant 0 : index
      %c0_59 = arith.constant 0 : index
      %185 = vector.load %arg2[%c0_58, %c0_59] : memref<16x32xf32, #tpu.memory_space<vmem>>, vector<16x32xf32>
      %c0_60 = arith.constant 0 : index
      %c0_61 = arith.constant 0 : index
      %186 = vector.load %arg14[%c0_60, %c0_61] : memref<16x32xf32, #tpu.memory_space<vmem>>, vector<16x32xf32>
      tpu.vector_store %arg14[%c0_60, %c0_61], %185 {strides = array<i32>} : memref<16x32xf32, #tpu.memory_space<vmem>>, vector<16x32xf32>,
      %187 = tpu.iota {dimensions = array<i32: 0>} : vector<8x8xi32>
      %188 = tpu.iota {dimensions = array<i32: 1>} : vector<8x8xi32>
      %189 = arith.cmpi sge, %187, %188 : vector<8x8xi32>
      %cst_62 = arith.constant 0.000000e+00 : f32
      %cst_63 = arith.constant -1.000000e+30 : f32
      %190 = vector.broadcast %cst_62 : f32 to vector<8x8xf32>
      %191 = vector.broadcast %cst_63 : f32 to vector<8x8xf32>
      %192 = arith.select %189, %190, %191 : vector<8x8xi1>, vector<8x8xf32>
      %c0_64 = arith.constant 0 : index
      %c0_65 = arith.constant 0 : index
      %193 = vector.load %arg15[%c0_64, %c0_65] : memref<8x8xf32, #tpu.memory_space<vmem>>, vector<8x8xf32>
      tpu.vector_store %arg15[%c0_64, %c0_65], %192 {strides = array<i32>} : memref<8x8xf32, #tpu.memory_space<vmem>>, vector<8x8xf32>,
    } else {
    }
    %c0 = arith.constant 0 : index
    %c0_1 = arith.constant 0 : index
    %3 = vector.load %arg14[%c0, %c0_1] : memref<16x32xf32, #tpu.memory_space<vmem>>, vector<16x32xf32>
    %c0_2 = arith.constant 0 : index
    %c0_3 = arith.constant 0 : index
    %c0_4 = arith.constant 0 : index
    %4 = vector.load %arg3[%c0_2, %c0_3, %c0_4] : memref<1x1x32xf32, #tpu.memory_space<vmem>>, vector<1x1x32xf32>
    %5 = vector.shape_cast %4 : vector<1x1x32xf32> to vector<1x32xf32>
    %c0_5 = arith.constant 0 : index
    %c0_6 = arith.constant 0 : index
    %c0_7 = arith.constant 0 : index
    %6 = vector.load %arg4[%c0_5, %c0_6, %c0_7] : memref<1x1x32xf32, #tpu.memory_space<vmem>>, vector<1x1x32xf32>
    %7 = vector.shape_cast %6 : vector<1x1x32xf32> to vector<1x32xf32>
    %cst = arith.constant dense<0.000000e+00> : vector<16xf32>
    %8 = vector.multi_reduction <add>, %3, %cst [1] : vector<16x32xf32> to vector<16xf32>
    %9 = vector.shape_cast %8 : vector<16xf32> to vector<16x1xf32>
    %cst_8 = arith.constant 3.200000e+01 : f32
    %10 = vector.broadcast %cst_8 : f32 to vector<16x1xf32>
    %11 = arith.divf %9, %10 : vector<16x1xf32>
    %12 = vector.broadcast %11 : vector<16x1xf32> to vector<16x32xf32>
    %13 = arith.subf %3, %12 : vector<16x32xf32>
    %14 = vector.broadcast %11 : vector<16x1xf32> to vector<16x32xf32>
    %15 = arith.subf %3, %14 : vector<16x32xf32>
    %16 = arith.mulf %13, %15 : vector<16x32xf32>
    %cst_9 = arith.constant dense<0.000000e+00> : vector<16xf32>
    %17 = vector.multi_reduction <add>, %16, %cst_9 [1] : vector<16x32xf32> to vector<16xf32>
    %18 = vector.shape_cast %17 : vector<16xf32> to vector<16x1xf32>
    %cst_10 = arith.constant 3.200000e+01 : f32
    %19 = vector.broadcast %cst_10 : f32 to vector<16x1xf32>
    %20 = arith.divf %18, %19 : vector<16x1xf32>
    %21 = vector.broadcast %11 : vector<16x1xf32> to vector<16x32xf32>
    %22 = arith.subf %3, %21 : vector<16x32xf32>
    %cst_11 = arith.constant 9.99999974E-6 : f32
    %23 = vector.broadcast %cst_11 : f32 to vector<16x1xf32>
    %24 = arith.addf %20, %23 : vector<16x1xf32>
    %25 = math.rsqrt %24 : vector<16x1xf32>
    %26 = vector.broadcast %25 : vector<16x1xf32> to vector<16x32xf32>
    %27 = arith.mulf %22, %26 : vector<16x32xf32>
    %28 = vector.broadcast %5 : vector<1x32xf32> to vector<16x32xf32>
    %29 = arith.mulf %27, %28 : vector<16x32xf32>
    %30 = vector.broadcast %7 : vector<1x32xf32> to vector<16x32xf32>
    %31 = arith.addf %29, %30 : vector<16x32xf32>
    %32 = arith.truncf %31 : vector<16x32xf32> to vector<16x32xbf16>
    %c0_12 = arith.constant 0 : index
    %c0_13 = arith.constant 0 : index
    %c0_14 = arith.constant 0 : index
    %33 = vector.load %arg5[%c0_12, %c0_13, %c0_14] : memref<1x32x96xbf16, #tpu.memory_space<vmem>>, vector<1x32x96xbf16>
    %34 = vector.shape_cast %33 : vector<1x32x96xbf16> to vector<32x96xbf16>
    %cst_15 = arith.constant dense<0.000000e+00> : vector<16x96xf32>
    %35 = tpu.matmul %32, %34, %cst_15 {dimension_numbers = #tpu.dot_dimension_numbers<[1], [0], [0], [1], [0, 0, 1, 1], [], []>} : vector<16x32xbf16>, vector<32x96xbf16>, vector<16x96xf32> -> vector<16x96xf32>
    %36 = vector.extract_strided_slice %35 {offsets = [0, 0], sizes = [8, 8], strides = [1, 1]} : vector<16x96xf32> to vector<8x8xf32>
    %37 = vector.extract_strided_slice %35 {offsets = [0, 32], sizes = [8, 8], strides = [1, 1]} : vector<16x96xf32> to vector<8x8xf32>
    %38 = vector.extract_strided_slice %35 {offsets = [0, 64], sizes = [8, 8], strides = [1, 1]} : vector<16x96xf32> to vector<8x8xf32>
    %39 = vector.extract_strided_slice %35 {offsets = [0, 8], sizes = [8, 8], strides = [1, 1]} : vector<16x96xf32> to vector<8x8xf32>
    %40 = vector.extract_strided_slice %35 {offsets = [0, 40], sizes = [8, 8], strides = [1, 1]} : vector<16x96xf32> to vector<8x8xf32>
    %41 = vector.extract_strided_slice %35 {offsets = [0, 72], sizes = [8, 8], strides = [1, 1]} : vector<16x96xf32> to vector<8x8xf32>
    %42 = vector.extract_strided_slice %35 {offsets = [0, 16], sizes = [8, 8], strides = [1, 1]} : vector<16x96xf32> to vector<8x8xf32>
    %43 = vector.extract_strided_slice %35 {offsets = [0, 48], sizes = [8, 8], strides = [1, 1]} : vector<16x96xf32> to vector<8x8xf32>
    %44 = vector.extract_strided_slice %35 {offsets = [0, 80], sizes = [8, 8], strides = [1, 1]} : vector<16x96xf32> to vector<8x8xf32>
    %45 = vector.extract_strided_slice %35 {offsets = [0, 24], sizes = [8, 8], strides = [1, 1]} : vector<16x96xf32> to vector<8x8xf32>
    %46 = vector.extract_strided_slice %35 {offsets = [0, 56], sizes = [8, 8], strides = [1, 1]} : vector<16x96xf32> to vector<8x8xf32>
    %47 = vector.extract_strided_slice %35 {offsets = [0, 88], sizes = [8, 8], strides = [1, 1]} : vector<16x96xf32> to vector<8x8xf32>
    %48 = vector.extract_strided_slice %35 {offsets = [8, 0], sizes = [8, 8], strides = [1, 1]} : vector<16x96xf32> to vector<8x8xf32>
    %49 = vector.extract_strided_slice %35 {offsets = [8, 32], sizes = [8, 8], strides = [1, 1]} : vector<16x96xf32> to vector<8x8xf32>
    %50 = vector.extract_strided_slice %35 {offsets = [8, 64], sizes = [8, 8], strides = [1, 1]} : vector<16x96xf32> to vector<8x8xf32>
    %51 = vector.extract_strided_slice %35 {offsets = [8, 8], sizes = [8, 8], strides = [1, 1]} : vector<16x96xf32> to vector<8x8xf32>
    %52 = vector.extract_strided_slice %35 {offsets = [8, 40], sizes = [8, 8], strides = [1, 1]} : vector<16x96xf32> to vector<8x8xf32>
    %53 = vector.extract_strided_slice %35 {offsets = [8, 72], sizes = [8, 8], strides = [1, 1]} : vector<16x96xf32> to vector<8x8xf32>
    %54 = vector.extract_strided_slice %35 {offsets = [8, 16], sizes = [8, 8], strides = [1, 1]} : vector<16x96xf32> to vector<8x8xf32>
    %55 = vector.extract_strided_slice %35 {offsets = [8, 48], sizes = [8, 8], strides = [1, 1]} : vector<16x96xf32> to vector<8x8xf32>
    %56 = vector.extract_strided_slice %35 {offsets = [8, 80], sizes = [8, 8], strides = [1, 1]} : vector<16x96xf32> to vector<8x8xf32>
    %57 = vector.extract_strided_slice %35 {offsets = [8, 24], sizes = [8, 8], strides = [1, 1]} : vector<16x96xf32> to vector<8x8xf32>
    %58 = vector.extract_strided_slice %35 {offsets = [8, 56], sizes = [8, 8], strides = [1, 1]} : vector<16x96xf32> to vector<8x8xf32>
    %59 = vector.extract_strided_slice %35 {offsets = [8, 88], sizes = [8, 8], strides = [1, 1]} : vector<16x96xf32> to vector<8x8xf32>
    %60 = vector.shape_cast %36 : vector<8x8xf32> to vector<1x8x8xf32>
    %61 = vector.shape_cast %39 : vector<8x8xf32> to vector<1x8x8xf32>
    %62 = vector.shape_cast %42 : vector<8x8xf32> to vector<1x8x8xf32>
    %63 = vector.shape_cast %45 : vector<8x8xf32> to vector<1x8x8xf32>
    %64 = vector.shape_cast %48 : vector<8x8xf32> to vector<1x8x8xf32>
    %65 = vector.shape_cast %51 : vector<8x8xf32> to vector<1x8x8xf32>
    %66 = vector.shape_cast %54 : vector<8x8xf32> to vector<1x8x8xf32>
    %67 = vector.shape_cast %57 : vector<8x8xf32> to vector<1x8x8xf32>
    %68 = tpu.concatenate %60, %61, %62, %63, %64, %65, %66, %67 in 0 : vector<1x8x8xf32>, vector<1x8x8xf32>, vector<1x8x8xf32>, vector<1x8x8xf32>, vector<1x8x8xf32>, vector<1x8x8xf32>, vector<1x8x8xf32>, vector<1x8x8xf32> -> vector<8x8x8xf32>
    %cst_16 = arith.constant 0.353553385 : f32
    %69 = vector.broadcast %cst_16 : f32 to vector<8x8x8xf32>
    %70 = arith.mulf %68, %69 : vector<8x8x8xf32>
    %71 = arith.truncf %70 : vector<8x8x8xf32> to vector<8x8x8xbf16>
    %72 = vector.shape_cast %37 : vector<8x8xf32> to vector<1x8x8xf32>
    %73 = vector.shape_cast %40 : vector<8x8xf32> to vector<1x8x8xf32>
    %74 = vector.shape_cast %43 : vector<8x8xf32> to vector<1x8x8xf32>
    %75 = vector.shape_cast %46 : vector<8x8xf32> to vector<1x8x8xf32>
    %76 = vector.shape_cast %49 : vector<8x8xf32> to vector<1x8x8xf32>
    %77 = vector.shape_cast %52 : vector<8x8xf32> to vector<1x8x8xf32>
    %78 = vector.shape_cast %55 : vector<8x8xf32> to vector<1x8x8xf32>
    %79 = vector.shape_cast %58 : vector<8x8xf32> to vector<1x8x8xf32>
    %80 = tpu.concatenate %72, %73, %74, %75, %76, %77, %78, %79 in 0 : vector<1x8x8xf32>, vector<1x8x8xf32>, vector<1x8x8xf32>, vector<1x8x8xf32>, vector<1x8x8xf32>, vector<1x8x8xf32>, vector<1x8x8xf32>, vector<1x8x8xf32> -> vector<8x8x8xf32>
    %81 = arith.truncf %80 : vector<8x8x8xf32> to vector<8x8x8xbf16>
    %82 = vector.shape_cast %38 : vector<8x8xf32> to vector<1x8x8xf32>
    %83 = vector.shape_cast %41 : vector<8x8xf32> to vector<1x8x8xf32>
    %84 = vector.shape_cast %44 : vector<8x8xf32> to vector<1x8x8xf32>
    %85 = vector.shape_cast %47 : vector<8x8xf32> to vector<1x8x8xf32>
    %86 = vector.shape_cast %50 : vector<8x8xf32> to vector<1x8x8xf32>
    %87 = vector.shape_cast %53 : vector<8x8xf32> to vector<1x8x8xf32>
    %88 = vector.shape_cast %56 : vector<8x8xf32> to vector<1x8x8xf32>
    %89 = vector.shape_cast %59 : vector<8x8xf32> to vector<1x8x8xf32>
    %90 = tpu.concatenate %82, %83, %84, %85, %86, %87, %88, %89 in 0 : vector<1x8x8xf32>, vector<1x8x8xf32>, vector<1x8x8xf32>, vector<1x8x8xf32>, vector<1x8x8xf32>, vector<1x8x8xf32>, vector<1x8x8xf32>, vector<1x8x8xf32> -> vector<8x8x8xf32>
    %91 = arith.truncf %90 : vector<8x8x8xf32> to vector<8x8x8xbf16>
    "tpu.trace_start"() <{level = 10 : i32, message = "gtd,gsd->gts"}> : () -> ()
    %cst_17 = arith.constant dense<0.000000e+00> : vector<8x8x8xf32>
    %92 = tpu.matmul %71, %81, %cst_17 {dimension_numbers = #tpu.dot_dimension_numbers<[2], [2], [1], [1], [0, 0, 0, 1, 1, 1], [0], [0]>} : vector<8x8x8xbf16>, vector<8x8x8xbf16>, vector<8x8x8xf32> -> vector<8x8x8xf32>
    "tpu.trace_stop"() : () -> ()
    %c0_18 = arith.constant 0 : index
    %c0_19 = arith.constant 0 : index
    %93 = vector.load %arg15[%c0_18, %c0_19] : memref<8x8xf32, #tpu.memory_space<vmem>>, vector<8x8xf32>
    %94 = vector.shape_cast %93 : vector<8x8xf32> to vector<1x8x8xf32>
    %95 = vector.broadcast %94 : vector<1x8x8xf32> to vector<8x8x8xf32>
    %96 = arith.addf %92, %95 : vector<8x8x8xf32>
    %cst_20 = arith.constant dense<0xFF800000> : vector<8x8xf32>
    %97 = vector.multi_reduction <maximumf>, %96, %cst_20 [2] : vector<8x8x8xf32> to vector<8x8xf32>
    %98 = vector.shape_cast %97 : vector<8x8xf32> to vector<8x8x1xf32>
    %99 = vector.broadcast %98 : vector<8x8x1xf32> to vector<8x8x8xf32>
    %100 = arith.subf %96, %99 : vector<8x8x8xf32>
    %101 = math.exp %100 : vector<8x8x8xf32>
    %cst_21 = arith.constant dense<0.000000e+00> : vector<8x8xf32>
    %102 = vector.multi_reduction <add>, %101, %cst_21 [2] : vector<8x8x8xf32> to vector<8x8xf32>
    %103 = vector.shape_cast %102 : vector<8x8xf32> to vector<8x8x1xf32>
    %104 = tpu.reciprocal %103 {approx = true} : vector<8x8x1xf32> -> vector<8x8x1xf32>
    %105 = vector.broadcast %104 : vector<8x8x1xf32> to vector<8x8x8xf32>
    %106 = arith.mulf %101, %105 : vector<8x8x8xf32>
    %107 = arith.truncf %106 : vector<8x8x8xf32> to vector<8x8x8xbf16>
    "tpu.trace_start"() <{level = 10 : i32, message = "gts,gsd->gtd"}> : () -> ()
    %cst_22 = arith.constant dense<0.000000e+00> : vector<8x8x8xf32>
    %108 = tpu.matmul %107, %91, %cst_22 {dimension_numbers = #tpu.dot_dimension_numbers<[2], [1], [1], [2], [0, 0, 0, 1, 1, 2], [0], [0]>} : vector<8x8x8xbf16>, vector<8x8x8xbf16>, vector<8x8x8xf32> -> vector<8x8x8xf32>
    "tpu.trace_stop"() : () -> ()
    %109 = vector.extract_strided_slice %108 {offsets = [0, 0, 0], sizes = [1, 8, 8], strides = [1, 1, 1]} : vector<8x8x8xf32> to vector<1x8x8xf32>
    %110 = vector.shape_cast %109 : vector<1x8x8xf32> to vector<8x8xf32>
    %111 = vector.extract_strided_slice %108 {offsets = [1, 0, 0], sizes = [1, 8, 8], strides = [1, 1, 1]} : vector<8x8x8xf32> to vector<1x8x8xf32>
    %112 = vector.shape_cast %111 : vector<1x8x8xf32> to vector<8x8xf32>
    %113 = vector.extract_strided_slice %108 {offsets = [2, 0, 0], sizes = [1, 8, 8], strides = [1, 1, 1]} : vector<8x8x8xf32> to vector<1x8x8xf32>
    %114 = vector.shape_cast %113 : vector<1x8x8xf32> to vector<8x8xf32>
    %115 = vector.extract_strided_slice %108 {offsets = [3, 0, 0], sizes = [1, 8, 8], strides = [1, 1, 1]} : vector<8x8x8xf32> to vector<1x8x8xf32>
    %116 = vector.shape_cast %115 : vector<1x8x8xf32> to vector<8x8xf32>
    %117 = tpu.concatenate %110, %112, %114, %116 in 1 : vector<8x8xf32>, vector<8x8xf32>, vector<8x8xf32>, vector<8x8xf32> -> vector<8x32xf32>
    %118 = vector.extract_strided_slice %108 {offsets = [4, 0, 0], sizes = [1, 8, 8], strides = [1, 1, 1]} : vector<8x8x8xf32> to vector<1x8x8xf32>
    %119 = vector.shape_cast %118 : vector<1x8x8xf32> to vector<8x8xf32>
    %120 = vector.extract_strided_slice %108 {offsets = [5, 0, 0], sizes = [1, 8, 8], strides = [1, 1, 1]} : vector<8x8x8xf32> to vector<1x8x8xf32>
    %121 = vector.shape_cast %120 : vector<1x8x8xf32> to vector<8x8xf32>
    %122 = vector.extract_strided_slice %108 {offsets = [6, 0, 0], sizes = [1, 8, 8], strides = [1, 1, 1]} : vector<8x8x8xf32> to vector<1x8x8xf32>
    %123 = vector.shape_cast %122 : vector<1x8x8xf32> to vector<8x8xf32>
    %124 = vector.extract_strided_slice %108 {offsets = [7, 0, 0], sizes = [1, 8, 8], strides = [1, 1, 1]} : vector<8x8x8xf32> to vector<1x8x8xf32>
    %125 = vector.shape_cast %124 : vector<1x8x8xf32> to vector<8x8xf32>
    %126 = tpu.concatenate %119, %121, %123, %125 in 1 : vector<8x8xf32>, vector<8x8xf32>, vector<8x8xf32>, vector<8x8xf32> -> vector<8x32xf32>
    %127 = tpu.concatenate %117, %126 in 0 : vector<8x32xf32>, vector<8x32xf32> -> vector<16x32xf32>
    %128 = arith.truncf %127 : vector<16x32xf32> to vector<16x32xbf16>
    %c0_23 = arith.constant 0 : index
    %c0_24 = arith.constant 0 : index
    %c0_25 = arith.constant 0 : index
    %129 = vector.load %arg6[%c0_23, %c0_24, %c0_25] : memref<1x32x32xbf16, #tpu.memory_space<vmem>>, vector<1x32x32xbf16>
    %130 = vector.shape_cast %129 : vector<1x32x32xbf16> to vector<32x32xbf16>
    %cst_26 = arith.constant dense<0.000000e+00> : vector<16x32xf32>
    %131 = tpu.matmul %128, %130, %cst_26 {dimension_numbers = #tpu.dot_dimension_numbers<[1], [0], [0], [1], [0, 0, 1, 1], [], []>} : vector<16x32xbf16>, vector<32x32xbf16>, vector<16x32xf32> -> vector<16x32xf32>
    %c0_27 = arith.constant 0 : index
    %c0_28 = arith.constant 0 : index
    %c0_29 = arith.constant 0 : index
    %132 = vector.load %arg7[%c0_27, %c0_28, %c0_29] : memref<1x1x32xf32, #tpu.memory_space<vmem>>, vector<1x1x32xf32>
    %133 = vector.shape_cast %132 : vector<1x1x32xf32> to vector<1x32xf32>
    %134 = vector.broadcast %133 : vector<1x32xf32> to vector<16x32xf32>
    %135 = arith.addf %131, %134 : vector<16x32xf32>
    %136 = arith.addf %3, %135 : vector<16x32xf32>
    %c0_30 = arith.constant 0 : index
    %c0_31 = arith.constant 0 : index
    %c0_32 = arith.constant 0 : index
    %137 = vector.load %arg8[%c0_30, %c0_31, %c0_32] : memref<1x1x32xf32, #tpu.memory_space<vmem>>, vector<1x1x32xf32>
    %138 = vector.shape_cast %137 : vector<1x1x32xf32> to vector<1x32xf32>
    %c0_33 = arith.constant 0 : index
    %c0_34 = arith.constant 0 : index
    %c0_35 = arith.constant 0 : index
    %139 = vector.load %arg9[%c0_33, %c0_34, %c0_35] : memref<1x1x32xf32, #tpu.memory_space<vmem>>, vector<1x1x32xf32>
    %140 = vector.shape_cast %139 : vector<1x1x32xf32> to vector<1x32xf32>
    %cst_36 = arith.constant dense<0.000000e+00> : vector<16xf32>
    %141 = vector.multi_reduction <add>, %136, %cst_36 [1] : vector<16x32xf32> to vector<16xf32>
    %142 = vector.shape_cast %141 : vector<16xf32> to vector<16x1xf32>
    %cst_37 = arith.constant 3.200000e+01 : f32
    %143 = vector.broadcast %cst_37 : f32 to vector<16x1xf32>
    %144 = arith.divf %142, %143 : vector<16x1xf32>
    %145 = vector.broadcast %144 : vector<16x1xf32> to vector<16x32xf32>
    %146 = arith.subf %136, %145 : vector<16x32xf32>
    %147 = vector.broadcast %144 : vector<16x1xf32> to vector<16x32xf32>
    %148 = arith.subf %136, %147 : vector<16x32xf32>
    %149 = arith.mulf %146, %148 : vector<16x32xf32>
    %cst_38 = arith.constant dense<0.000000e+00> : vector<16xf32>
    %150 = vector.multi_reduction <add>, %149, %cst_38 [1] : vector<16x32xf32> to vector<16xf32>
    %151 = vector.shape_cast %150 : vector<16xf32> to vector<16x1xf32>
    %cst_39 = arith.constant 3.200000e+01 : f32
    %152 = vector.broadcast %cst_39 : f32 to vector<16x1xf32>
    %153 = arith.divf %151, %152 : vector<16x1xf32>
    %154 = vector.broadcast %144 : vector<16x1xf32> to vector<16x32xf32>
    %155 = arith.subf %136, %154 : vector<16x32xf32>
    %cst_40 = arith.constant 9.99999974E-6 : f32
    %156 = vector.broadcast %cst_40 : f32 to vector<16x1xf32>
    %157 = arith.addf %153, %156 : vector<16x1xf32>
    %158 = math.rsqrt %157 : vector<16x1xf32>
    %159 = vector.broadcast %158 : vector<16x1xf32> to vector<16x32xf32>
    %160 = arith.mulf %155, %159 : vector<16x32xf32>
    %161 = vector.broadcast %138 : vector<1x32xf32> to vector<16x32xf32>
    %162 = arith.mulf %160, %161 : vector<16x32xf32>
    %163 = vector.broadcast %140 : vector<1x32xf32> to vector<16x32xf32>
    %164 = arith.addf %162, %163 : vector<16x32xf32>
    %165 = arith.truncf %164 : vector<16x32xf32> to vector<16x32xbf16>
    %c0_41 = arith.constant 0 : index
    %c0_42 = arith.constant 0 : index
    %c0_43 = arith.constant 0 : index
    %166 = vector.load %arg10[%c0_41, %c0_42, %c0_43] : memref<1x32x128xbf16, #tpu.memory_space<vmem>>, vector<1x32x128xbf16>
    %167 = vector.shape_cast %166 : vector<1x32x128xbf16> to vector<32x128xbf16>
    %cst_44 = arith.constant dense<0.000000e+00> : vector<16x128xf32>
    %168 = tpu.matmul %165, %167, %cst_44 {dimension_numbers = #tpu.dot_dimension_numbers<[1], [0], [0], [1], [0, 0, 1, 1], [], []>} : vector<16x32xbf16>, vector<32x128xbf16>, vector<16x128xf32> -> vector<16x128xf32>
    %c0_45 = arith.constant 0 : index
    %c0_46 = arith.constant 0 : index
    %c0_47 = arith.constant 0 : index
    %169 = vector.load %arg11[%c0_45, %c0_46, %c0_47] : memref<1x1x128xf32, #tpu.memory_space<vmem>>, vector<1x1x128xf32>
    %170 = vector.shape_cast %169 : vector<1x1x128xf32> to vector<1x128xf32>
    %171 = vector.broadcast %170 : vector<1x128xf32> to vector<16x128xf32>
    %172 = arith.addf %168, %171 : vector<16x128xf32>
    %cst_48 = arith.constant 0.000000e+00 : f32
    %173 = vector.broadcast %cst_48 : f32 to vector<16x128xf32>
    %174 = arith.maximumf %172, %173 : vector<16x128xf32>
    %175 = arith.truncf %174 : vector<16x128xf32> to vector<16x128xbf16>
    %c0_49 = arith.constant 0 : index
    %c0_50 = arith.constant 0 : index
    %c0_51 = arith.constant 0 : index
    %176 = vector.load %arg12[%c0_49, %c0_50, %c0_51] : memref<1x128x32xbf16, #tpu.memory_space<vmem>>, vector<1x128x32xbf16>
    %177 = vector.shape_cast %176 : vector<1x128x32xbf16> to vector<128x32xbf16>
    %cst_52 = arith.constant dense<0.000000e+00> : vector<16x32xf32>
    %178 = tpu.matmul %175, %177, %cst_52 {dimension_numbers = #tpu.dot_dimension_numbers<[1], [0], [0], [1], [0, 0, 1, 1], [], []>} : vector<16x128xbf16>, vector<128x32xbf16>, vector<16x32xf32> -> vector<16x32xf32>
    %179 = arith.addf %136, %178 : vector<16x32xf32>
    %c0_53 = arith.constant 0 : index
    %c0_54 = arith.constant 0 : index
    %c0_55 = arith.constant 0 : index
    %180 = vector.load %arg13[%c0_53, %c0_54, %c0_55] : memref<1x1x32xf32, #tpu.memory_space<vmem>>, vector<1x1x32xf32>
    %181 = vector.shape_cast %180 : vector<1x1x32xf32> to vector<1x32xf32>
    %182 = vector.broadcast %181 : vector<1x32xf32> to vector<16x32xf32>
    %183 = arith.addf %179, %182 : vector<16x32xf32>
    %c0_56 = arith.constant 0 : index
    %c0_57 = arith.constant 0 : index
    %184 = vector.load %arg14[%c0_56, %c0_57] : memref<16x32xf32, #tpu.memory_space<vmem>>, vector<16x32xf32>
    tpu.vector_store %arg14[%c0_56, %c0_57], %183 {strides = array<i32>} : memref<16x32xf32, #tpu.memory_space<vmem>>, vector<16x32xf32>,
    return
  }
  func.func @transform_0(%arg0: i32, %arg1: i32) -> (i32, i32) {
    %c0_i32 = arith.constant 0 : i32
    %c0_i32_0 = arith.constant 0 : i32
    return %arg0, %c0_i32 : i32, i32
  }
  func.func @transform_1(%arg0: i32, %arg1: i32) -> (i32, i32, i32) {
    %c0_i32 = arith.constant 0 : i32
    %c0_i32_0 = arith.constant 0 : i32
    %c0_i32_1 = arith.constant 0 : i32
    return %arg1, %c0_i32, %c0_i32_0 : i32, i32, i32
  }
  func.func @transform_2(%arg0: i32, %arg1: i32) -> (i32, i32, i32) {
    %c0_i32 = arith.constant 0 : i32
    %c0_i32_0 = arith.constant 0 : i32
    %c0_i32_1 = arith.constant 0 : i32
    return %arg1, %c0_i32, %c0_i32_0 : i32, i32, i32
  }
  func.func @transform_3(%arg0: i32, %arg1: i32) -> (i32, i32, i32) {
    %c0_i32 = arith.constant 0 : i32
    %c0_i32_0 = arith.constant 0 : i32
    %c0_i32_1 = arith.constant 0 : i32
    return %arg1, %c0_i32, %c0_i32_0 : i32, i32, i32
  }
  func.func @transform_4(%arg0: i32, %arg1: i32) -> (i32, i32, i32) {
    %c0_i32 = arith.constant 0 : i32
    %c0_i32_0 = arith.constant 0 : i32
    %c0_i32_1 = arith.constant 0 : i32
    return %arg1, %c0_i32, %c0_i32_0 : i32, i32, i32
  }
  func.func @transform_5(%arg0: i32, %arg1: i32) -> (i32, i32, i32) {
    %c0_i32 = arith.constant 0 : i32
    %c0_i32_0 = arith.constant 0 : i32
    %c0_i32_1 = arith.constant 0 : i32
    return %arg1, %c0_i32, %c0_i32_0 : i32, i32, i32
  }
  func.func @transform_6(%arg0: i32, %arg1: i32) -> (i32, i32, i32) {
    %c0_i32 = arith.constant 0 : i32
    %c0_i32_0 = arith.constant 0 : i32
    %c0_i32_1 = arith.constant 0 : i32
    return %arg1, %c0_i32, %c0_i32_0 : i32, i32, i32
  }
  func.func @transform_7(%arg0: i32, %arg1: i32) -> (i32, i32, i32) {
    %c0_i32 = arith.constant 0 : i32
    %c0_i32_0 = arith.constant 0 : i32
    %c0_i32_1 = arith.constant 0 : i32
    return %arg1, %c0_i32, %c0_i32_0 : i32, i32, i32
  }
  func.func @transform_8(%arg0: i32, %arg1: i32) -> (i32, i32, i32) {
    %c0_i32 = arith.constant 0 : i32
    %c0_i32_0 = arith.constant 0 : i32
    %c0_i32_1 = arith.constant 0 : i32
    return %arg1, %c0_i32, %c0_i32_0 : i32, i32, i32
  }
  func.func @transform_9(%arg0: i32, %arg1: i32) -> (i32, i32, i32) {
    %c0_i32 = arith.constant 0 : i32
    %c0_i32_0 = arith.constant 0 : i32
    %c0_i32_1 = arith.constant 0 : i32
    return %arg1, %c0_i32, %c0_i32_0 : i32, i32, i32
  }
  func.func @transform_10(%arg0: i32, %arg1: i32) -> (i32, i32, i32) {
    %c0_i32 = arith.constant 0 : i32
    %c0_i32_0 = arith.constant 0 : i32
    %c0_i32_1 = arith.constant 0 : i32
    return %arg1, %c0_i32, %c0_i32_0 : i32, i32, i32
  }
  func.func @transform_11(%arg0: i32, %arg1: i32) -> (i32, i32, i32) {
    %c0_i32 = arith.constant 0 : i32
    %c0_i32_0 = arith.constant 0 : i32
    %c0_i32_1 = arith.constant 0 : i32
    return %arg1, %c0_i32, %c0_i32_0 : i32, i32, i32
  }
  func.func @transform_12(%arg0: i32, %arg1: i32) -> (i32, i32) {
    %c0_i32 = arith.constant 0 : i32
    %c0_i32_0 = arith.constant 0 : i32
    return %arg0, %c0_i32 : i32, i32
  }
}

</mosaic_0001>

<bundles_post_ra>
// kernel: gpt_forward.3
= control target key start
LH: loop header
LB: loop body
LE: loop exit
PB: predicated region body
PF: predicated region fallthrough
CT: control target
= control target key end

     0   :  { %vm26_vm0 = vcmask 261120   ;;  %s271_s0 = inlined_call_operand.vmem [shape: f32[16,32], index: 0, kind: input, shape index: {}]   ;;  %s272_s1 = inlined_call_operand.vmem [shape: f32[1,32], index: 1, kind: input, shape index: {}]   ;;  %s273_s2 = inlined_call_operand.vmem [shape: f32[1,32], index: 2, kind: input, shape index: {}]   ;;  %s274_s3 = inlined_call_operand.vmem [shape: bf16[32,64], index: 3, kind: input, shape index: {}]   ;;  %s275_s4 = inlined_call_operand.vmem [shape: f32[1,64], index: 4, kind: input, shape index: {}]   ;;  %s276_s5 = inlined_call_operand.hbm [shape: f32[16,64], index: 5, kind: output, shape index: {}]  }
   0x1   :  { %v22_v0 = vld [vmem:[%s271_s0] sm:$0xff]  ;;  %v23_v1 = vld [vmem:[%s271_s0 + $0x8] sm:$0xff] }
   0x2   :  { %v27_v2 = vsel %vm26_vm0, %v22_v0, 0.0 }
   0x3   :  { %28 = vadd.xlane.f32.xlu0 %v27_v2 }
   0x4   :  { %10 = vsyncpa [#allocation3], 0  ;;  %v30_v3 = vsel %vm26_vm0, %v23_v1, 0.0  ;;  %v179_v14 = vld [vmem:[%s274_s3 + $0x8] sm:$0xff]   ;;  %v207_v15 = vmov 0.0   ;;  %vm208_vm1 = vmmov 0  }
   0x5   :  { %166 = vmatprep.subr.bf16.mxu0 %v207_v15  ;;  %170 = vmatprep.mubr.msk.bf16.mxu0 %vm208_vm1, %v207_v15  ;;  %v180_v16 = vld [vmem:[%s274_s3] sm:$0xff]   ;;  %vm138_vm2 = vcmask 523264  }
   0x6   :  { %167 = vmatpush3.bf16.msra.mxu0 %v179_v14  ;;  %v157_v25 = vld [vmem:[%s272_s1] ss:$0 sm:$0xff]  ;;  %s209_s1 = smov [#allocation2]  }
   0x7   :  { %31 = vadd.xlane.f32.xlu0 %v30_v3  ;;  %168 = vmatprep.subr.bf16.mxu0 %v207_v15  ;;  %v158_v29 = vld [vmem:[%s273_s2] ss:$0 sm:$0xff]  ;;  %s146_s30 = sshll.u32 %s209_s1, 4  ;;  %s147_s30 = int_to_ptr.vmem [resolvable:$true] %s146_s30 }
   0x8   :  { %v159_v34 = vld [vmem:[%s275_s4] ss:$0 sm:$0xff]  ;;  %s185_s2 = scalar_lea.vmem %s147_s30, 256  ;;  %p190_p1 = scmp.lt.s32.totalorder %s147_s30, %s147_s30 }
   0x9   :  { %p186_p0 = scmp.ne.s32.totalorder %s147_s30, %s185_s2  ;;  %p191_p2 = scmp.lt.s32.totalorder %s185_s2, %s185_s2 }
   0xa   :  { %169 = vmatpush3.bf16.msra.mxu0 %v180_v16 }
   0xb   :  { %p192_p3 = por %p191_p2, %p190_p1 }
   0xd   :  { %p193_p4 = pnand %p192_p3, %p186_p0 }
  0x8c   :  { %v29_v4 = vpop.xlane.xlu0 %28 }
  0x8d   :  { %v34_v5 = vmul.f32 0.03125, %v29_v4 }
  0x8f   :  { %v36_v6 = vsub.f32 %v22_v0, %v34_v5 }
  0x90   :  { %v32_v7 = vpop.xlane.xlu0 %31 }
  0x91   :  { %v35_v8 = vmul.f32 0.03125, %v32_v7  ;;  %v38_v9 = vmul.f32 %v36_v6, %v36_v6 }
  0x93   :  { %v37_v10 = vsub.f32 %v23_v1, %v35_v8  ;;  %v40_v11 = vsel %vm26_vm0, %v38_v9, 0.0 }
  0x94   :  { %41 = vadd.xlane.f32.xlu1 %v40_v11 }
  0x95   :  { %v39_v12 = vmul.f32 %v37_v10, %v37_v10 }
  0x97   :  { %v43_v13 = vsel %vm26_vm0, %v39_v12, 0.0 }
  0x98   :  { %44 = vadd.xlane.f32.xlu1 %v43_v13 }
 0x11d   :  { %v42_v17 = vpop.xlane.xlu1 %41 }
 0x11e   :  { %v46_v18 = vmul.f32 0.03125, %v42_v17 }
 0x120   :  { %v48_v19 = vadd.f32 1e-05, %v46_v18 }
 0x121   :  { %v45_v20 = vpop.xlane.xlu1 %44 }
 0x122   :  { %181 = vrsqrt.f32 %v48_v19  ;;  %v47_v21 = vmul.f32 0.03125, %v45_v20 }
 0x124   :  { %v49_v22 = vadd.f32 1e-05, %v47_v21 }
 0x126   :  { %183 = vrsqrt.f32 %v49_v22 }
 0x12f   :  { %v182_v23 = vpop.eup %181 }
 0x130   :  { %v52_v24 = vmul.f32 %v182_v23, %v36_v6 }
 0x132   :  { %v60_v28 = vmul.f32 %v157_v25, %v52_v24 }
 0x133   :  { %v184_v26 = vpop.eup %183 }
 0x134   :  { %v53_v27 = vmul.f32 %v184_v26, %v37_v10  ;;  %v68_v31 = vadd.f32 %v158_v29, %v60_v28 }
 0x136   :  { %v61_v30 = vmul.f32 %v157_v25, %v53_v27 }
 0x138   :  { %v69_v32 = vadd.f32 %v158_v29, %v61_v30 }
 0x13a   :  { %v70_v33 = vpack.c.bf16 %v69_v32, %v68_v31 }
 0x13c   :  { %171 = vmatmul.mubr.msk.bf16.vlgmr.msra.gmra.mxu0 %vm26_vm0, %v70_v33 }
 0x1fc   :  { %v131_v35 = vpop.f32.mrf.mxu0 }
 0x1fd   :  { %v132_v36 = vadd.f32 %v159_v34, %v131_v35 }
 0x1fe   :  { %v172_v37 = vpop.f32.mrf.mxu0 }
 0x1ff   :  { %139 = vst.msk [vmem:[#allocation2] sm:$0xff] %vm138_vm2, %v132_v36 }
 0x200   :  { %v134_v38 = vpop.f32.mrf.mxu0 }
 0x201   :  { %v135_v39 = vadd.f32 %v159_v34, %v134_v38 }
 0x202   :  { %v173_v40 = vpop.f32.mrf.mxu0 }
 0x203   :  { %140 = vst.msk [vmem:[#allocation2 + $0x8] sm:$0xff] %vm138_vm2, %v135_v39 }
 0x204   :  { %196 = shalt.err (!%p193_p4)
}
 0x205   :  { %s210_s4 = smov 128   ;;  %s211_s6 = smov 8  }
 0x206   :  { %152 = dma.vmem_to_hbm [thread:$0]  %s147_s30, 256, %s276_s5, [#allocation3], %s210_s4, %s210_s4, %s211_s6  }
 0x207   :  { %205 = dma.done.wait [#allocation3], 256  }
 0x208   :  { %206 = vsyncadd [#allocation3], 4294967040 }
 0x209   :  { %156 = vsyncpa [#allocation3], 1 }

// kernel: gpt_forward.2
= control target key start
LH: loop header
LB: loop body
LE: loop exit
PB: predicated region body
PF: predicated region fallthrough
CT: control target
= control target key end

     0   :  { %s2620_s21 = smov 0   ;;  %s2622_s22 = smov 0   ;;  %s3027_s0 = inlined_call_operand.vmem [shape: f32[16,32], index: 0, kind: input, shape index: {}, may-alias: {0,12}]   ;;  %s3028_s1 = inlined_call_operand.vmem [shape: f32[2,1,32], index: 1, kind: input, shape index: {}]   ;;  %s3029_s2 = inlined_call_operand.vmem [shape: f32[2,1,32], index: 2, kind: input, shape index: {}]   ;;  %s3030_s3 = inlined_call_operand.vmem [shape: bf16[2,32,96], index: 3, kind: input, shape index: {}]   ;;  %s3031_s4 = inlined_call_operand.vmem [shape: bf16[2,32,32], index: 4, kind: input, shape index: {}]   ;;  %s3032_s5 = inlined_call_operand.vmem [shape: f32[2,1,32], index: 5, kind: input, shape index: {}]   ;;  %s3033_s6 = inlined_call_operand.vmem [shape: f32[2,1,32], index: 6, kind: input, shape index: {}]   ;;  %s3034_s7 = inlined_call_operand.vmem [shape: f32[2,1,32], index: 7, kind: input, shape index: {}]   ;;  %s3035_s8 = inlined_call_operand.vmem [shape: bf16[2,32,128], index: 8, kind: input, shape index: {}]   ;;  %s3036_s9 = inlined_call_operand.vmem [shape: f32[2,1,128], index: 9, kind: input, shape index: {}]   ;;  %s3037_s10 = inlined_call_operand.vmem [shape: bf16[2,128,32], index: 10, kind: input, shape index: {}]   ;;  %s3038_s11 = inlined_call_operand.vmem [shape: f32[2,1,32], index: 11, kind: input, shape index: {}]   ;;  %s3039_s12 = inlined_call_operand.vmem [shape: f32[16,32], index: 12, kind: output, shape index: {}, may-alias: {0,12}]  }
   0x1   :  { %3042 = sst [smem:[#allocation6_spill]] %s3030_s3  ;;  %s2624_s23 = smov 0  }
   0x2   :  { %3043 = sst [smem:[#allocation7_spill]] %s3031_s4 }
   0x3   :  { %3044 = sst [smem:[#allocation8_spill]] %s3032_s5 }
   0x4 LB: > { %3045 = sst [smem:[#allocation3_spill]] %s2538_s22  ;;  %s31_s24 = sadd.s32 1, %s2538_s22  ;;  %s2542_s23 = sphi %s2624_s23, %s22_s23   ;;  %s2538_s22 = sphi %s2622_s22, %s3058_s22   ;;  %s2534_s21 = sphi %s2620_s21, %s3057_s21  }
   0x5   : > { %3046 = sst [smem:[#allocation4_spill]] %s2542_s23  ;;  %p2168_p0 = scmp.ge.s32.totalorder %s2542_s23, 1 }
   0x6   : > { %p32_p1 = scmp.ge.s32.totalorder %s31_s24, 2  ;;  %p471_p2 = scmp.lt.s32.totalorder %s2542_s23, 3 }
   0x8   : > { %s3060_s24 = smov (%p32_p1, %s31_s24), 0  ;;  %p472_p3 = pnand %p2168_p0, %p471_p2 }
   0x9   : > { %3047 = sst [smem:[#allocation5_spill]] %s3060_s24  ;;  %p560_p4 = scmp.lt.s32.totalorder (!%p472_p3), %s2534_s21, 1 }
   0xa   : > { %475 = sbr.rel (%p472_p3) target bundleno = 2595 (0xa23), region = 68  ;;  %s3049_s3 = sld [smem:[#allocation6_spill]] (!%p472_p3) }
   0xb   : > { %s3050_s4 = sld [smem:[#allocation7_spill]] (!%p472_p3)  ;;  %p2177_p5 = scmp.ne.s32.totalorder (!%p472_p3), %s2534_s21, 0 }
   0xf   : > { %s2638_s25 = scalar_select %p560_p4, %s2534_s21, 1 }
  0x11   : > { %s2222_s14 = sshll.u32 %s2638_s25, 4  ;;  %s584_s23 = scalar_lea.vmem %s3034_s7, %s2638_s25 }
  0x12   : > { %s2656_s20 = scalar_lea.vmem %s3049_s3, %s2222_s14  ;;  %s2661_s24 = scalar_lea.vmem %s3050_s4, %s2222_s14 }
  0x13   : > { %s2674_s17 = scalar_lea.vmem %s3035_s8, %s2222_s14  ;;  %s592_s3 = scalar_lea.vmem %s3036_s9, %s2638_s25 }
  0x14   : > { %s2225_s26 = sshll.u32 %s2638_s25, 6  ;;  %s600_s5 = scalar_lea.vmem %s3038_s11, %s2638_s25 }
  0x15   : > { %s2688_s29 = scalar_lea.vmem %s3037_s10, %s2225_s26  ;;  %611 = sbr.rel (%p2177_p5) target bundleno = 33 (0x21), region = 72 }
  0x1a   : > { %v612_v0 = vld [vmem:[%s3027_s0] sm:$0xff]  ;;  %vm614_vm0 = vcmask 261120   ;;  %v613_v1 = vld [vmem:[%s3027_s0 + $0x8] sm:$0xff]  ;;  %v617_v2 = vlaneseq  ;;  %vm623_vm1 = vcmask 64512   ;;  %v2544_v5 = vmov -1e+30  }
  0x1b   : > { %615 = vst.msk [vmem:[%s3039_s12] sm:$0xff] %vm614_vm0, %v612_v0  ;;  %616 = vst.msk [vmem:[%s3039_s12 + $0x8] sm:$0xff] %vm614_vm0, %v613_v1 }
  0x1c   : > { %v618_v3 = vshrl.u32 %v617_v2, 7  ;;  %v620_v4 = vand.u32 127, %v617_v2 }
  0x1e   : > { %vm621_vm2 = vcmp.ge.s32.totalorder %v618_v3, %v620_v4 }
  0x1f   : > { %v622_v6 = vsel %vm621_vm2, 0.0, %v2544_v5 }
  0x20   : > { %624 = vst.msk [vmem:[#allocation2] sm:$0xff] %vm623_vm1, %v622_v6 }
  0x21 PF: > { %vm629_vm3 = vcmask 261120   ;;  %v2466_v21 = vld [vmem:[%s2656_s20 + $0x8] sm:$0xff]   ;;  %v2545_v22 = vmov 0.0   ;;  %vm2546_vm4 = vmmov 0   ;;  %v2467_v23 = vld [vmem:[%s2656_s20] sm:$0xff]   ;;  %s3051_s13 = scalar_lea.vmem %s3028_s1, %s2638_s25  ;;  %s3052_s15 = scalar_lea.vmem %s3029_s2, %s2638_s25  ;;  %vm782_vm5 = vcmask 64512  }
  0x22   : > { %v2705_v7 = vld [vmem:[%s3039_s12] sm:$0xff]  ;;  %v2710_v8 = vld [vmem:[%s3039_s12 + $0x8] sm:$0xff]  ;;  %2276 = vmatprep.subr.bf16.mxu0 %v2545_v22  ;;  %2280 = vmatprep.mubr.msk.bf16.mxu0 %vm2546_vm4, %v2545_v22  ;;  %s2547_s16 = smov 112   ;;  %s2548_s4 = smov 120   ;;  %vm1273_vm6 = vcmask 1043456   ;;  %vm1666_vm7 = vcmask 130048  }
  0x23   : > { %v630_v9 = vsel %vm629_vm3, %v2705_v7, 0.0  ;;  %v633_v10 = vsel %vm629_vm3, %v2710_v8, 0.0  ;;  %2277 = vmatpush3.bf16.msra.mxu0 %v2466_v21  ;;  %2296 = vmatprep.subr.bf16.mxu1 %v2545_v22  ;;  %v2178_v32 = vld [vmem:[%s3051_s13] ss:$0 sm:$0xff]  ;;  %s2549_s18 = smov 104   ;;  %s2550_s19 = smov 96  }
  0x24   : > { %631 = vadd.xlane.f32.xlu0 %v630_v9  ;;  %2278 = vmatprep.subr.bf16.mxu0 %v2545_v22  ;;  %v2179_v36 = vld [vmem:[%s3052_s15] ss:$0 sm:$0xff]  ;;  %s2551_s21 = smov 64   ;;  %s2552_s26 = smov 16   ;;  %vm1668_vm8 = vcmask 195584  }
  0x25   : > { %2298 = vmatprep.mubr.msk.bf16.mxu1 %vm2546_vm4, %v2545_v22  ;;  %s2553_s27 = smov 8   ;;  %s2554_s22 = smov 24  }
  0x26   : > { %s3053_s28 = sld [smem:[#allocation8_spill]]  ;;  %s3055_s14 = scalar_lea.vmem %s3033_s6, %s2638_s25 }
  0x27   : > { %2279 = vmatpush3.bf16.msra.mxu0 %v2467_v23 }
  0x28   : > { %634 = vadd.xlane.f32.xlu0 %v633_v10  ;;  %2284 = vmatprep.subr.bf16.mxu0 %v2545_v22 }
  0x2c   : > { %s3054_s13 = scalar_lea.vmem %s3053_s28, %s2638_s25 }
  0xad   : > { %v632_v11 = vpop.xlane.xlu0 %631 }
  0xae   : > { %v637_v12 = vmul.f32 0.03125, %v632_v11 }
  0xb0   : > { %v639_v13 = vsub.f32 %v2705_v7, %v637_v12 }
  0xb1   : > { %v635_v14 = vpop.xlane.xlu0 %634 }
  0xb2   : > { %v638_v15 = vmul.f32 0.03125, %v635_v14  ;;  %v641_v16 = vmul.f32 %v639_v13, %v639_v13 }
  0xb4   : > { %v640_v17 = vsub.f32 %v2710_v8, %v638_v15  ;;  %v643_v18 = vsel %vm629_vm3, %v641_v16, 0.0 }
  0xb5   : > { %644 = vadd.xlane.f32.xlu1 %v643_v18 }
  0xb6   : > { %v642_v19 = vmul.f32 %v640_v17, %v640_v17 }
  0xb8   : > { %v646_v20 = vsel %vm629_vm3, %v642_v19, 0.0 }
  0xb9   : > { %647 = vadd.xlane.f32.xlu1 %v646_v20 }
 0x13e   : > { %v645_v24 = vpop.xlane.xlu1 %644 }
 0x13f   : > { %v649_v25 = vmul.f32 0.03125, %v645_v24 }
 0x141   : > { %v651_v26 = vadd.f32 1e-05, %v649_v25 }
 0x142   : > { %v648_v27 = vpop.xlane.xlu1 %647 }
 0x143   : > { %2480 = vrsqrt.f32 %v651_v26  ;;  %v650_v28 = vmul.f32 0.03125, %v648_v27 }
 0x145   : > { %v652_v29 = vadd.f32 1e-05, %v650_v28 }
 0x147   : > { %2482 = vrsqrt.f32 %v652_v29 }
 0x150   : > { %v2481_v30 = vpop.eup %2480 }
 0x151   : > { %v655_v31 = vmul.f32 %v2481_v30, %v639_v13  ;;  %v2807_v30 = vld [vmem:[#allocation2] sm:$0xff] }
 0x153   : > { %v663_v35 = vmul.f32 %v2178_v32, %v655_v31 }
 0x154   : > { %v2483_v33 = vpop.eup %2482 }
 0x155   : > { %v656_v34 = vmul.f32 %v2483_v33, %v640_v17  ;;  %v671_v38 = vadd.f32 %v2179_v36, %v663_v35 }
 0x157   : > { %v664_v37 = vmul.f32 %v2178_v32, %v656_v34 }
 0x159   : > { %v672_v39 = vadd.f32 %v2179_v36, %v664_v37 }
 0x15b   : > { %v673_v40 = vpack.c.bf16 %v672_v39, %v671_v38 }
 0x15d   : > { %2281 = vmatmul.mubr.msk.bf16.vlgmr.msra.gmra.mxu0 %vm629_vm3, %v673_v40 }
 0x15e   : > { %2286 = vmatprep.mubr.msk.bf16.mxu0 %vm2546_vm4, %v2545_v22 }
 0x21d   : > { %v727_v41 = vpop.f32.mrf.mxu0 }
 0x21e   : > { %738 = vrot.lane.b32.xlu1 %v727_v41, %s2547_s16  ;;  %735 = vrot.lane.b32.xlu0 %v727_v41, %s2548_s4  ;;  %v2743_v45 = vpack.c.bf16 %v727_v41, %v727_v41  ;;  %v754_v59 = vmul.f32 0.35355338, %v727_v41 }
 0x21f   : > { %v2282_v42 = vpop.f32.mrf.mxu0 }
 0x220   : > { %v762_v62 = vpack.c.bf16 %v754_v59, %v754_v59 }
 0x221   : > { %v730_v43 = vpop.f32.mrf.mxu0 }
 0x222   : > { %741 = vrot.lane.b32.xlu1 %v727_v41, %s2549_s18  ;;  %748 = vrot.lane.b32.xlu0 %v730_v43, %s2547_s16  ;;  %v2754_v53 = vpack.c.bf16 %v730_v43, %v730_v43  ;;  %v758_v13 = vmul.f32 0.35355338, %v730_v43 }
 0x223   : > { %v2283_v44 = vpop.f32.mrf.mxu0 }
 0x224   : > { %v766_v17 = vpack.c.bf16 %v758_v13, %v758_v13 }
 0x226   : > { %780 = vrot.lane.b32.xlu0 %v2743_v45, %s2550_s19  ;;  %745 = vrot.lane.b32.xlu1 %v730_v43, %s2548_s4 }
 0x22a   : > { %751 = vrot.lane.b32.xlu1 %v730_v43, %s2549_s18 }
 0x290   : > { %v739_v46 = vpop.permute.xlu1 %738  ;;  %v736_v47 = vpop.permute.xlu0 %735 }
 0x291   : > { %v2746_v48 = vpack.c.bf16 %v739_v46, %v739_v46  ;;  %v2748_v49 = vpack.c.bf16 %v736_v47, %v736_v47  ;;  %v756_v3 = vmul.f32 0.35355338, %v739_v46  ;;  %v755_v4 = vmul.f32 0.35355338, %v736_v47 }
 0x293   : > { %879 = vrot.lane.b32.xlu0 %v2746_v48, %s2550_s19  ;;  %830 = vrot.lane.b32.xlu1 %v2748_v49, %s2550_s19  ;;  %v764_v9 = vpack.c.bf16 %v756_v3, %v756_v3  ;;  %v763_v10 = vpack.c.bf16 %v755_v4, %v755_v4 }
 0x294   : > { %v742_v50 = vpop.permute.xlu1 %741  ;;  %v749_v51 = vpop.permute.xlu0 %748 }
 0x295   : > { %v2752_v52 = vpack.c.bf16 %v742_v50, %v742_v50  ;;  %v2758_v56 = vpack.c.bf16 %v749_v51, %v749_v51  ;;  %v757_v14 = vmul.f32 0.35355338, %v742_v50  ;;  %v760_v21 = vmul.f32 0.35355338, %v749_v51 }
 0x297   : > { %928 = vrot.lane.b32.xlu1 %v2752_v52, %s2550_s19  ;;  %977 = vrot.lane.b32.xlu0 %v2754_v53, %s2550_s19  ;;  %v765_v18 = vpack.c.bf16 %v757_v14, %v757_v14  ;;  %v768_v25 = vpack.c.bf16 %v760_v21, %v760_v21 }
 0x298   : > { %v781_v54 = vpop.permute.xlu0 %780  ;;  %v746_v55 = vpop.permute.xlu1 %745 }
 0x299   : > { %v787_v57 = vsel %vm782_vm5, %v781_v54, 0  ;;  %v2761_v58 = vpack.c.bf16 %v746_v55, %v746_v55  ;;  %v759_v23 = vmul.f32 0.35355338, %v746_v55 }
 0x29a   : > { %2285 = vmatpush3.bf16.xpose.msra.mxu0 %v787_v57 }
 0x29b   : > { %1026 = vrot.lane.b32.xlu1 %v2761_v58, %s2550_s19  ;;  %1075 = vrot.lane.b32.xlu0 %v2758_v56, %s2550_s19  ;;  %v767_v26 = vpack.c.bf16 %v759_v23, %v759_v23 }
 0x29c   : > { %v752_v60 = vpop.permute.xlu1 %751  ;;  %2290 = vmatprep.subr.bf16.mxu0 %v2545_v22 }
 0x29d   : > { %v2766_v61 = vpack.c.bf16 %v752_v60, %v752_v60  ;;  %v761_v28 = vmul.f32 0.35355338, %v752_v60 }
 0x29f   : > { %1124 = vrot.lane.b32.xlu1 %v2766_v61, %s2550_s19  ;;  %v769_v29 = vpack.c.bf16 %v761_v28, %v761_v28 }
 0x2a1   : > { %2287 = vmatmul.mubr.msk.bf16.vlgmr.msra.gmra.mxu0 %vm782_vm5, %v762_v62 }
 0x2a2   : > { %2292 = vmatprep.mubr.msk.bf16.mxu0 %vm2546_vm4, %v2545_v22 }
 0x305   : > { %v880_v63 = vpop.permute.xlu0 %879  ;;  %v831_v0 = vpop.permute.xlu1 %830 }
 0x306   : > { %v836_v1 = vsel %vm782_vm5, %v831_v0, 0  ;;  %v885_v2 = vsel %vm782_vm5, %v880_v63, 0 }
 0x307   : > { %2291 = vmatpush3.bf16.xpose.msra.mxu0 %v836_v1  ;;  %2297 = vmatpush3.bf16.xpose.msra.mxu1 %v885_v2 }
 0x308   : > { %2302 = vmatprep.subr.bf16.mxu0 %v2545_v22  ;;  %2308 = vmatprep.subr.bf16.mxu1 %v2545_v22 }
 0x309   : > { %v929_v5 = vpop.permute.xlu1 %928  ;;  %v978_v6 = vpop.permute.xlu0 %977 }
 0x30a   : > { %v934_v11 = vsel %vm782_vm5, %v929_v5, 0  ;;  %v983_v12 = vsel %vm782_vm5, %v978_v6, 0 }
 0x30d   : > { %v1027_v15 = vpop.permute.xlu1 %1026  ;;  %v1076_v16 = vpop.permute.xlu0 %1075 }
 0x30e   : > { %2293 = vmatmul.mubr.msk.bf16.vlgmr.msra.gmra.mxu0 %vm782_vm5, %v763_v10  ;;  %2299 = vmatmul.mubr.msk.bf16.vlgmr.msra.gmra.mxu1 %vm782_vm5, %v764_v9  ;;  %v1032_v19 = vsel %vm782_vm5, %v1027_v15, 0  ;;  %v1081_v20 = vsel %vm782_vm5, %v1076_v16, 0 }
 0x30f   : > { %2303 = vmatpush3.bf16.xpose.msra.mxu0 %v934_v11  ;;  %2309 = vmatpush3.bf16.xpose.msra.mxu1 %v983_v12 }
 0x310   : > { %2304 = vmatprep.mubr.msk.bf16.mxu0 %vm2546_vm4, %v2545_v22  ;;  %2310 = vmatprep.mubr.msk.bf16.mxu1 %vm2546_vm4, %v2545_v22 }
 0x311   : > { %2314 = vmatprep.subr.bf16.mxu0 %v2545_v22  ;;  %2320 = vmatprep.subr.bf16.mxu1 %v2545_v22  ;;  %v1125_v24 = vpop.permute.xlu1 %1124 }
 0x312   : > { %v1130_v27 = vsel %vm782_vm5, %v1125_v24, 0 }
 0x316   : > { %2305 = vmatmul.mubr.msk.bf16.vlgmr.msra.gmra.mxu0 %vm782_vm5, %v765_v18  ;;  %2311 = vmatmul.mubr.msk.bf16.vlgmr.msra.gmra.mxu1 %vm782_vm5, %v766_v17 }
 0x317   : > { %2315 = vmatpush3.bf16.xpose.msra.mxu0 %v1032_v19  ;;  %2321 = vmatpush3.bf16.xpose.msra.mxu1 %v1081_v20 }
 0x318   : > { %2316 = vmatprep.mubr.msk.bf16.mxu0 %vm2546_vm4, %v2545_v22  ;;  %2322 = vmatprep.mubr.msk.bf16.mxu1 %vm2546_vm4, %v2545_v22 }
 0x319   : > { %2326 = vmatprep.subr.bf16.mxu0 %v2545_v22  ;;  %2332 = vmatprep.subr.bf16.mxu1 %v2545_v22 }
 0x31e   : > { %2317 = vmatmul.mubr.msk.bf16.vlgmr.msra.gmra.mxu0 %vm782_vm5, %v767_v26  ;;  %2323 = vmatmul.mubr.msk.bf16.vlgmr.msra.gmra.mxu1 %vm782_vm5, %v768_v25 }
 0x31f   : > { %2327 = vmatpush3.bf16.xpose.msra.mxu0 %v1130_v27  ;;  %2328 = vmatprep.mubr.msk.bf16.mxu0 %vm2546_vm4, %v2545_v22 }
 0x320   : > { %2338 = vmatprep.subr.bf16.mxu0 %v2545_v22  ;;  %2334 = vmatprep.mubr.msk.bf16.mxu1 %vm2546_vm4, %v2545_v22 }
 0x326   : > { %2329 = vmatmul.mubr.msk.bf16.vlgmr.msra.gmra.mxu0 %vm782_vm5, %v769_v29 }
 0x327   : > { %2340 = vmatprep.mubr.msk.bf16.mxu0 %vm2546_vm4, %v2545_v22 }
 0x361   : > { %v823_v31 = vpop.f32.mrf.mxu0 }
 0x362   : > { %v824_v32 = vadd.f32 %v823_v31, %v2807_v30 }
 0x363   : > { %v2288_v33 = vpop.f32.mrf.mxu0 }
 0x364   : > { %v1172_v34 = vsel %vm782_vm5, %v824_v32, -inf }
 0x365   : > { %1173 = vmax.xlane.f32.xlu0 %v1172_v34  ;;  %v826_v35 = vpop.f32.mrf.mxu0 }
 0x367   : > { %v2289_v36 = vpop.f32.mrf.mxu0 }
 0x3ce   : > { %v872_v37 = vpop.f32.mrf.mxu0  ;;  %v921_v38 = vpop.f32.mrf.mxu1 }
 0x3cf   : > { %v2812_v39 = vadd.f32 %v872_v37, %v2807_v30  ;;  %v922_v40 = vadd.f32 %v921_v38, %v2807_v30 }
 0x3d0   : > { %v2294_v41 = vpop.f32.mrf.mxu0  ;;  %v2300_v42 = vpop.f32.mrf.mxu1 }
 0x3d1   : > { %v1178_v43 = vsel %vm782_vm5, %v922_v40, -inf  ;;  %v1175_v44 = vsel %vm782_vm5, %v2812_v39, -inf }
 0x3d2   : > { %v924_v46 = vpop.f32.mrf.mxu1  ;;  %1179 = vmax.xlane.f32.xlu0 %v1178_v43  ;;  %1176 = vmax.xlane.f32.xlu1 %v1175_v44  ;;  %v875_v47 = vpop.f32.mrf.mxu0 }
 0x3d4   : > { %v2295_v50 = vpop.f32.mrf.mxu0  ;;  %v2301_v51 = vpop.f32.mrf.mxu1 }
 0x3d6   : > { %v970_v54 = vpop.f32.mrf.mxu0  ;;  %v1019_v55 = vpop.f32.mrf.mxu1 }
 0x3d7   : > { %v2819_v57 = vadd.f32 %v970_v54, %v2807_v30  ;;  %v2822_v62 = vadd.f32 %v1019_v55, %v2807_v30 }
 0x3d8   : > { %v2306_v59 = vpop.f32.mrf.mxu0  ;;  %v2312_v60 = vpop.f32.mrf.mxu1 }
 0x3d9   : > { %v1181_v63 = vsel %vm782_vm5, %v2819_v57, -inf  ;;  %v1184_v4 = vsel %vm782_vm5, %v2822_v62, -inf }
 0x3da   : > { %v1022_v0 = vpop.f32.mrf.mxu1  ;;  %1182 = vmax.xlane.f32.xlu0 %v1181_v63  ;;  %v973_v1 = vpop.f32.mrf.mxu0 }
 0x3dc   : > { %v2307_v2 = vpop.f32.mrf.mxu0  ;;  %v2313_v3 = vpop.f32.mrf.mxu1 }
 0x3de   : > { %v1117_v5 = vpop.f32.mrf.mxu1  ;;  %1185 = vmax.xlane.f32.xlu0 %v1184_v4  ;;  %v1068_v6 = vpop.f32.mrf.mxu0 }
 0x3df   : > { %v2829_v9 = vadd.f32 %v1117_v5, %v2807_v30  ;;  %v2832_v10 = vadd.f32 %v1068_v6, %v2807_v30 }
 0x3e0   : > { %v2318_v11 = vpop.f32.mrf.mxu0  ;;  %v2324_v12 = vpop.f32.mrf.mxu1 }
 0x3e1   : > { %v1190_v13 = vsel %vm782_vm5, %v2829_v9, -inf  ;;  %v1187_v14 = vsel %vm782_vm5, %v2832_v10, -inf }
 0x3e2   : > { %v1120_v15 = vpop.f32.mrf.mxu1  ;;  %1191 = vmax.xlane.f32.xlu0 %v1190_v13  ;;  %1188 = vmax.xlane.f32.xlu1 %v1187_v14  ;;  %v1071_v16 = vpop.f32.mrf.mxu0 }
 0x3e4   : > { %v2319_v17 = vpop.f32.mrf.mxu0  ;;  %v2325_v18 = vpop.f32.mrf.mxu1 }
 0x3e6   : > { %v1166_v19 = vpop.f32.mrf.mxu0 }
 0x3e7   : > { %v1167_v28 = vadd.f32 %v1166_v19, %v2807_v30 }
 0x3e8   : > { %v2330_v20 = vpop.f32.mrf.mxu0 }
 0x3ea   : > { %v1169_v21 = vpop.f32.mrf.mxu0 }
 0x3ec   : > { %v2331_v23 = vpop.f32.mrf.mxu0 }
 0x3ee   : > { %v1174_v24 = vpop.xlane.xlu0 %1173 }
 0x3ef   : > { %v1196_v25 = vsub.f32 %v824_v32, %v1174_v24 }
 0x3f1   : > { %v1204_v26 = vmul.f32 1.442695, %v1196_v25 }
 0x3f3   : > { %1317 = vrot.lane.b32.xlu1 %v2748_v49, %s2551_s21  ;;  %2484 = vpow2.f32 %v1204_v26  ;;  %v1193_v49 = vsel %vm782_vm5, %v1167_v28, -inf }
 0x3f7   : > { %1365 = vrot.lane.b32.xlu1 %v2746_v48, %s2551_s21 }
 0x3f8   : > { %1268 = vrot.lane.b32.xlu0 %v2743_v45, %s2551_s21 }
 0x400   : > { %v2844_v27 = vpop.eup %2484 }
 0x401   : > { %v1220_v29 = vsel %vm782_vm5, %v2844_v27, 0.0 }
 0x417   : > { %1221 = vadd.xlane.f32.xlu0 %v1220_v29 }
 0x41b   : > { %1194 = vmax.xlane.f32.xlu1 %v1193_v49 }
 0x42c   : > { %1413 = vrot.lane.b32.xlu1 %v2752_v52, %s2551_s21 }
 0x45b   : > { %v1180_v48 = vpop.xlane.xlu0 %1179  ;;  %v1177_v45 = vpop.xlane.xlu1 %1176 }
 0x45c   : > { %v1198_v31 = vsub.f32 %v922_v40, %v1180_v48  ;;  %v1197_v32 = vsub.f32 %v2812_v39, %v1177_v45 }
 0x45e   : > { %v1208_v33 = vmul.f32 1.442695, %v1198_v31  ;;  %v1206_v34 = vmul.f32 1.442695, %v1197_v32 }
 0x460   : > { %2486 = vpow2.f32 %v1208_v33 }
 0x461   : > { %2488 = vpow2.f32 %v1206_v34 }
 0x463   : > { %v1183_v30 = vpop.xlane.xlu0 %1182 }
 0x464   : > { %v1199_v47 = vsub.f32 %v2819_v57, %v1183_v30 }
 0x466   : > { %v1210_v54 = vmul.f32 1.442695, %v1199_v47 }
 0x467   : > { %v1186_v35 = vpop.xlane.xlu0 %1185 }
 0x468   : > { %v1200_v46 = vsub.f32 %v2822_v62, %v1186_v35 }
 0x46a   : > { %v1212_v50 = vmul.f32 1.442695, %v1200_v46 }
 0x46b   : > { %v1192_v36 = vpop.xlane.xlu0 %1191  ;;  %v1189_v37 = vpop.xlane.xlu1 %1188 }
 0x46c   : > { %v1202_v51 = vsub.f32 %v2829_v9, %v1192_v36  ;;  %v1201_v55 = vsub.f32 %v2832_v10, %v1189_v37  ;;  %2490 = vpow2.f32 %v1212_v50 }
 0x46d   : > { %v2853_v38 = vpop.eup %2486  ;;  %2492 = vpow2.f32 %v1210_v54 }
 0x46e   : > { %v2855_v41 = vpop.eup %2488  ;;  %v1226_v52 = vsel %vm782_vm5, %v2853_v38, 0.0  ;;  %v1216_v59 = vmul.f32 1.442695, %v1202_v51  ;;  %v1214_v60 = vmul.f32 1.442695, %v1201_v55 }
 0x46f   : > { %1227 = vadd.xlane.f32.xlu0 %v1226_v52  ;;  %v1269_v40 = vpop.permute.xlu0 %1268  ;;  %v1318_v42 = vpop.permute.xlu1 %1317  ;;  %v1223_v39 = vsel %vm782_vm5, %v2855_v41, 0.0 }
 0x470   : > { %v1275_v43 = vsel %vm1273_vm6, %v1269_v40, 0  ;;  %v1323_v44 = vsel %vm1273_vm6, %v1318_v42, 0  ;;  %1224 = vadd.xlane.f32.xlu1 %v1223_v39  ;;  %2494 = vpow2.f32 %v1216_v59 }
 0x471   : > { %2333 = vmatpush3.bf16.msra.mxu1 %v1275_v43  ;;  %2339 = vmatpush3.bf16.msra.mxu0 %v1323_v44  ;;  %2496 = vpow2.f32 %v1214_v60 }
 0x472   : > { %2344 = vmatprep.subr.bf16.mxu1 %v2545_v22  ;;  %2350 = vmatprep.subr.bf16.mxu0 %v2545_v22 }
 0x473   : > { %v1366_v63 = vpop.permute.xlu1 %1365 }
 0x474   : > { %v1371_v13 = vsel %vm1273_vm6, %v1366_v63, 0 }
 0x481   : > { %1509 = vrot.lane.b32.xlu1 %v2761_v58, %s2551_s21  ;;  %v2873_v58 = vpop.eup %2490 }
 0x482   : > { %v2875_v0 = vpop.eup %2492  ;;  %v1232_v57 = vsel %vm782_vm5, %v2873_v58, 0.0 }
 0x483   : > { %v2879_v62 = vpop.eup %2494  ;;  %v1229_v1 = vsel %vm782_vm5, %v2875_v0, 0.0 }
 0x484   : > { %v2883_v3 = vpop.eup %2496  ;;  %v1238_v6 = vsel %vm782_vm5, %v2879_v62, 0.0 }
 0x485   : > { %1461 = vrot.lane.b32.xlu0 %v2754_v53, %s2551_s21  ;;  %v1235_v9 = vsel %vm782_vm5, %v2883_v3, 0.0 }
 0x4a0   : > { %v1222_v53 = vpop.xlane.xlu0 %1221 }
 0x4a1   : > { %2498 = vrcp.f32 %v1222_v53 }
 0x4a4   : > { %1233 = vadd.xlane.f32.xlu0 %v1232_v57  ;;  %v1195_v2 = vpop.xlane.xlu1 %1194 }
 0x4a5   : > { %1230 = vadd.xlane.f32.xlu1 %v1229_v1  ;;  %v1203_v4 = vsub.f32 %v1167_v28, %v1195_v2 }
 0x4a7   : > { %v1218_v5 = vmul.f32 1.442695, %v1203_v4 }
 0x4a8   : > { %1239 = vadd.xlane.f32.xlu0 %v1238_v6  ;;  %v1414_v16 = vpop.permute.xlu1 %1413 }
 0x4a9   : > { %2500 = vpow2.f32 %v1218_v5  ;;  %1236 = vadd.xlane.f32.xlu1 %v1235_v9  ;;  %v2468_v5 = vld [vmem:[%s2661_s24 + $0x8] sm:$0xff]  }
 0x4ae   : > { %v2499_v10 = vpop.eup %2498 }
 0x4af   : > { %v1252_v11 = vmul.f32 %v2499_v10, %v2844_v27 }
 0x4b1   : > { %v1260_v12 = vpack.c.bf16 %v1252_v11, %v1252_v11 }
 0x4b3   : > { %2335 = vmatmul.mubr.msk.bf16.vlgmr.msra.gmra.mxu1 %vm782_vm5, %v1260_v12 }
 0x4b4   : > { %2345 = vmatpush3.bf16.msra.mxu1 %v1371_v13  ;;  %2346 = vmatprep.mubr.msk.bf16.mxu1 %vm2546_vm4, %v2545_v22 }
 0x4b5   : > { %2356 = vmatprep.subr.bf16.mxu1 %v2545_v22 }
 0x4b6   : > { %v2895_v14 = vpop.eup %2500 }
 0x4b7   : > { %v1241_v15 = vsel %vm782_vm5, %v2895_v14, 0.0 }
 0x4b8   : > { %1242 = vadd.xlane.f32.xlu1 %v1241_v15 }
 0x4be   : > { %1557 = vrot.lane.b32.xlu0 %v2758_v56, %s2551_s21  ;;  %v1419_v56 = vsel %vm1273_vm6, %v1414_v16, 0 }
 0x4c9   : > { %1605 = vrot.lane.b32.xlu1 %v2766_v61, %s2551_s21 }
 0x4f8   : > { %v1228_v17 = vpop.xlane.xlu0 %1227 }
 0x4f9   : > { %2502 = vrcp.f32 %v1228_v17  ;;  %v1225_v18 = vpop.xlane.xlu1 %1224 }
 0x4fa   : > { %2504 = vrcp.f32 %v1225_v18 }
 0x4fc   : > { %v1462_v23 = vpop.permute.xlu0 %1461 }
 0x4fd   : > { %v1467_v27 = vsel %vm1273_vm6, %v1462_v23, 0  ;;  %v1510_v61 = vpop.permute.xlu1 %1509 }
 0x506   : > { %v2503_v19 = vpop.eup %2502 }
 0x507   : > { %v2505_v20 = vpop.eup %2504  ;;  %v1254_v21 = vmul.f32 %v2503_v19, %v2853_v38 }
 0x508   : > { %v1253_v24 = vmul.f32 %v2505_v20, %v2855_v41  ;;  %v1515_v41 = vsel %vm1273_vm6, %v1510_v61, 0 }
 0x509   : > { %v1262_v25 = vpack.c.bf16 %v1254_v21, %v1254_v21  ;;  %v2469_v21 = vld [vmem:[%s2661_s24] sm:$0xff]  }
 0x50a   : > { %v1261_v26 = vpack.c.bf16 %v1253_v24, %v1253_v24 }
 0x50b   : > { %2347 = vmatmul.mubr.msk.bf16.vlgmr.msra.gmra.mxu1 %vm782_vm5, %v1262_v25 }
 0x50c   : > { %2341 = vmatmul.mubr.msk.bf16.vlgmr.msra.gmra.mxu0 %vm782_vm5, %v1261_v26  ;;  %2357 = vmatpush3.bf16.msra.mxu1 %v1467_v27 }
 0x50d   : > { %2351 = vmatpush3.bf16.msra.mxu0 %v1419_v56  ;;  %2352 = vmatprep.mubr.msk.bf16.mxu0 %vm2546_vm4, %v2545_v22 }
 0x50e   : > { %2358 = vmatprep.mubr.msk.bf16.mxu1 %vm2546_vm4, %v2545_v22  ;;  %2362 = vmatprep.subr.bf16.mxu0 %v2545_v22 }
 0x50f   : > { %2368 = vmatprep.subr.bf16.mxu1 %v2545_v22 }
 0x52d   : > { %v1234_v28 = vpop.xlane.xlu0 %1233 }
 0x52e   : > { %2506 = vrcp.f32 %v1234_v28  ;;  %v1231_v29 = vpop.xlane.xlu1 %1230 }
 0x52f   : > { %2508 = vrcp.f32 %v1231_v29 }
 0x531   : > { %v1240_v49 = vpop.xlane.xlu0 %1239 }
 0x532   : > { %2510 = vrcp.f32 %v1240_v49  ;;  %v1237_v48 = vpop.xlane.xlu1 %1236 }
 0x533   : > { %2512 = vrcp.f32 %v1237_v48 }
 0x535   : > { %v1558_v33 = vpop.permute.xlu0 %1557 }
 0x536   : > { %v1563_v38 = vsel %vm1273_vm6, %v1558_v33, 0 }
 0x53b   : > { %v2507_v45 = vpop.eup %2506 }
 0x53c   : > { %v2509_v31 = vpop.eup %2508  ;;  %v1256_v32 = vmul.f32 %v2507_v45, %v2873_v58 }
 0x53d   : > { %v1255_v34 = vmul.f32 %v2509_v31, %v2875_v0 }
 0x53e   : > { %v1264_v30 = vpack.c.bf16 %v1256_v32, %v1256_v32 }
 0x53f   : > { %v2511_v35 = vpop.eup %2510  ;;  %v1263_v36 = vpack.c.bf16 %v1255_v34, %v1255_v34 }
 0x540   : > { %v2513_v37 = vpop.eup %2512  ;;  %2359 = vmatmul.mubr.msk.bf16.vlgmr.msra.gmra.mxu1 %vm782_vm5, %v1264_v30  ;;  %v1258_v40 = vmul.f32 %v2511_v35, %v2879_v62 }
 0x541   : > { %2353 = vmatmul.mubr.msk.bf16.vlgmr.msra.gmra.mxu0 %vm782_vm5, %v1263_v36  ;;  %2369 = vmatpush3.bf16.msra.mxu1 %v1563_v38  ;;  %v1243_v52 = vpop.xlane.xlu1 %1242  ;;  %v1257_v42 = vmul.f32 %v2513_v37, %v2883_v3 }
 0x542   : > { %2363 = vmatpush3.bf16.msra.mxu0 %v1515_v41  ;;  %2514 = vrcp.f32 %v1243_v52  ;;  %2364 = vmatprep.mubr.msk.bf16.mxu0 %vm2546_vm4, %v2545_v22  ;;  %v1266_v43 = vpack.c.bf16 %v1258_v40, %v1258_v40 }
 0x543   : > { %2370 = vmatprep.mubr.msk.bf16.mxu1 %vm2546_vm4, %v2545_v22  ;;  %2374 = vmatprep.subr.bf16.mxu0 %v2545_v22  ;;  %v1265_v46 = vpack.c.bf16 %v1257_v42, %v1257_v42  ;;  %v2199_v42 = vld [vmem:[%s3054_s13] ss:$0 sm:$0xff] }
 0x544   : > { %2380 = vmatprep.subr.bf16.mxu1 %v2545_v22 }
 0x545   : > { %v1606_v39 = vpop.permute.xlu1 %1605 }
 0x546   : > { %v1611_v44 = vsel %vm1273_vm6, %v1606_v39, 0 }
 0x548   : > { %2371 = vmatmul.mubr.msk.bf16.vlgmr.msra.gmra.mxu1 %vm782_vm5, %v1266_v43 }
 0x549   : > { %2365 = vmatmul.mubr.msk.bf16.vlgmr.msra.gmra.mxu0 %vm782_vm5, %v1265_v46  ;;  %2384 = vmatprep.mubr.msk.bf16.mxu1 %vm2546_vm4, %v2545_v22 }
 0x54a   : > { %2375 = vmatpush3.bf16.msra.mxu0 %v1611_v44  ;;  %2376 = vmatprep.mubr.msk.bf16.mxu0 %vm2546_vm4, %v2545_v22 }
 0x54b   : > { %2388 = vmatprep.subr.bf16.mxu0 %v2545_v22  ;;  %2381 = vmatpush3.bf16.msra.mxu1 %v2468_v5  ;;  %v2473_v5 = vld [vmem:[%s2688_s29 + $0x30] sm:$0xff]  }
 0x54c   : > { %2382 = vmatprep.subr.bf16.mxu1 %v2545_v22 }
 0x54f   : > { %v2515_v47 = vpop.eup %2514  ;;  %2383 = vmatpush3.bf16.msra.mxu1 %v2469_v21 }
 0x550   : > { %v1259_v50 = vmul.f32 %v2515_v47, %v2895_v14  ;;  %2396 = vmatprep.subr.bf16.mxu1 %v2545_v22 }
 0x552   : > { %v1267_v51 = vpack.c.bf16 %v1259_v50, %v1259_v50 }
 0x554   : > { %2377 = vmatmul.mubr.msk.bf16.vlgmr.msra.gmra.mxu0 %vm782_vm5, %v1267_v51 }
 0x555   : > { %2392 = vmatprep.mubr.msk.bf16.mxu0 %vm2546_vm4, %v2545_v22 }
 0x573   : > { %v1311_v54 = vpop.f32.mrf.mxu1 }
 0x575   : > { %v2336_v55 = vpop.f32.mrf.mxu1 }
 0x577   : > { %v1314_v59 = vpop.f32.mrf.mxu1 }
 0x579   : > { %v2337_v60 = vpop.f32.mrf.mxu1 }
 0x5cb   : > { %v1407_v58 = vpop.f32.mrf.mxu1 }
 0x5cc   : > { %v1359_v63 = vpop.f32.mrf.mxu0 }
 0x5cd   : > { %v2348_v53 = vpop.f32.mrf.mxu1 }
 0x5ce   : > { %v2342_v0 = vpop.f32.mrf.mxu0 }
 0x5cf   : > { %v1410_v57 = vpop.f32.mrf.mxu1 }
 0x5d0   : > { %v1362_v62 = vpop.f32.mrf.mxu0 }
 0x5d1   : > { %v2349_v1 = vpop.f32.mrf.mxu1 }
 0x5d2   : > { %v2343_v2 = vpop.f32.mrf.mxu0 }
 0x5d3   : > { %v2470_v2 = vld [vmem:[%s2674_s17 + $0x8] sm:$0xff]  }
 0x5d4   : > { %2389 = vmatpush3.bf16.msra.mxu0 %v2470_v2 }
 0x5d5   : > { %2390 = vmatprep.subr.bf16.mxu0 %v2545_v22 }
 0x600   : > { %v1503_v3 = vpop.f32.mrf.mxu1 }
 0x601   : > { %v1455_v4 = vpop.f32.mrf.mxu0 }
 0x602   : > { %v2360_v6 = vpop.f32.mrf.mxu1 }
 0x603   : > { %v2354_v9 = vpop.f32.mrf.mxu0  ;;  %v2474_v6 = vld [vmem:[%s2688_s29 + $0x28] sm:$0xff]  }
 0x604   : > { %v1506_v10 = vpop.f32.mrf.mxu1  ;;  %v2475_v9 = vld [vmem:[%s2688_s29 + $0x20] sm:$0xff]  }
 0x605   : > { %v1458_v11 = vpop.f32.mrf.mxu0  ;;  %v2476_v10 = vld [vmem:[%s2688_s29 + $0x18] sm:$0xff]  }
 0x606   : > { %v2361_v12 = vpop.f32.mrf.mxu1 }
 0x607   : > { %v2355_v13 = vpop.f32.mrf.mxu0 }
 0x608   : > { %v1599_v14 = vpop.f32.mrf.mxu1 }
 0x609   : > { %v1551_v15 = vpop.f32.mrf.mxu0  ;;  %v2456_v16 = vpack.i.bf16 %v1599_v14, %v1407_v58 }
 0x60a   : > { %v2451_v17 = vpack.i.bf16 %v1551_v15, %v1359_v63  ;;  %v2372_v18 = vpop.f32.mrf.mxu1 }
 0x60b   : > { %v2366_v19 = vpop.f32.mrf.mxu0  ;;  %2457 = vrot.lane.b32.xlu1 %v2456_v16, %s2552_s26 }
 0x60c   : > { %2452 = vrot.lane.b32.xlu0 %v2451_v17, %s2553_s27  ;;  %v1602_v20 = vpop.f32.mrf.mxu1  ;;  %v2203_v19 = vld [vmem:[%s3055_s14] ss:$0 sm:$0xff] }
 0x60d   : > { %v1554_v23 = vpop.f32.mrf.mxu0 }
 0x60e   : > { %v2373_v24 = vpop.f32.mrf.mxu1 }
 0x60f   : > { %v2367_v25 = vpop.f32.mrf.mxu0  ;;  %v2204_v24 = vld [vmem:[%s584_s23] ss:$0 sm:$0xff] }
 0x614   : > { %v1647_v26 = vpop.f32.mrf.mxu0 }
 0x615   : > { %v2461_v27 = vpack.i.bf16 %v1647_v26, %v1455_v4  ;;  %v2472_v4 = vld [vmem:[%s2688_s29 + $0x38] sm:$0xff]  }
 0x616   : > { %v2378_v56 = vpop.f32.mrf.mxu0 }
 0x617   : > { %2462 = vrot.lane.b32.xlu0 %v2461_v27, %s2554_s22 }
 0x618   : > { %v1650_v61 = vpop.f32.mrf.mxu0 }
 0x619   : > { %v2477_v61 = vld [vmem:[%s2688_s29 + $0x10] sm:$0xff]  }
 0x61a   : > { %v2379_v28 = vpop.f32.mrf.mxu0 }
 0x61b   : > { %v2478_v28 = vld [vmem:[%s2688_s29 + $0x8] sm:$0xff]  }
 0x67d   : > { %v2458_v49 = vpop.permute.xlu1 %2457 }
 0x67e   : > { %v2453_v29 = vpop.permute.xlu0 %2452  ;;  %v2460_v31 = vunpack.i.h.bf16 %v2458_v49  ;;  %v2459_v32 = vunpack.i.l.bf16 %v2458_v49  ;;  %v2205_v49 = vld [vmem:[%s592_s3] ss:$0 sm:$0xff] }
 0x67f   : > { %v2455_v48 = vunpack.i.h.bf16 %v2453_v29  ;;  %v2454_v45 = vunpack.i.l.bf16 %v2453_v29  ;;  %v2479_v29 = vld [vmem:[%s2688_s29] sm:$0xff]  }
 0x681   : > { %v1682_v33 = vsel %vm782_vm5, %v1503_v3, %v2455_v48  ;;  %v1665_v34 = vsel %vm782_vm5, %v1311_v54, %v2454_v45  ;;  %v2471_v3 = vld [vmem:[%s2674_s17] sm:$0xff]  }
 0x682   : > { %v1667_v37 = vsel %vm1666_vm7, %v1665_v34, %v2459_v32  ;;  %v1683_v38 = vsel %vm1666_vm7, %v1682_v33, %v2460_v31  ;;  %2391 = vmatpush3.bf16.msra.mxu0 %v2471_v3 }
 0x689   : > { %v2463_v30 = vpop.permute.xlu0 %2462 }
 0x68a   : > { %v2465_v35 = vunpack.i.h.bf16 %v2463_v30  ;;  %v2464_v36 = vunpack.i.l.bf16 %v2463_v30 }
 0x68c   : > { %v1684_v41 = vsel %vm1668_vm8, %v1683_v38, %v2465_v35  ;;  %v1669_v52 = vsel %vm1668_vm8, %v1667_v37, %v2464_v36 }
 0x68d   : > { %v1685_v40 = vpack.c.bf16 %v1684_v41, %v1669_v52 }
 0x68f   : > { %2385 = vmatmul.mubr.msk.bf16.vlgmr.msra.gmra.mxu1 %vm629_vm3, %v1685_v40 }
 0x690   : > { %2412 = vmatprep.mubr.msk.bf16.mxu1 %vm2546_vm4, %v2545_v22  ;;  %2397 = vmatpush3.bf16.msra.mxu1 %v2472_v4 }
 0x691   : > { %2398 = vmatprep.subr.bf16.mxu1 %v2545_v22 }
 0x694   : > { %2399 = vmatpush3.bf16.msra.mxu1 %v2473_v5 }
 0x695   : > { %2400 = vmatprep.subr.bf16.mxu1 %v2545_v22 }
 0x698   : > { %2401 = vmatpush3.bf16.msra.mxu1 %v2474_v6 }
 0x699   : > { %2402 = vmatprep.subr.bf16.mxu1 %v2545_v22 }
 0x69c   : > { %2403 = vmatpush3.bf16.msra.mxu1 %v2475_v9 }
 0x69d   : > { %2404 = vmatprep.subr.bf16.mxu1 %v2545_v22 }
 0x6a0   : > { %2405 = vmatpush3.bf16.msra.mxu1 %v2476_v10 }
 0x6a1   : > { %2406 = vmatprep.subr.bf16.mxu1 %v2545_v22 }
 0x6a4   : > { %2407 = vmatpush3.bf16.msra.mxu1 %v2477_v61 }
 0x6a5   : > { %2408 = vmatprep.subr.bf16.mxu1 %v2545_v22 }
 0x6a8   : > { %2409 = vmatpush3.bf16.msra.mxu1 %v2478_v28 }
 0x6a9   : > { %2410 = vmatprep.subr.bf16.mxu1 %v2545_v22  ;;  %v2217_v22 = vld [vmem:[%s600_s5] ss:$0 sm:$0xff] }
 0x6ac   : > { %2411 = vmatpush3.bf16.msra.mxu1 %v2479_v29 }
 0x74f   : > { %v1746_v39 = vpop.f32.mrf.mxu1 }
 0x750   : > { %v1747_v43 = vadd.f32 %v2199_v42, %v1746_v39 }
 0x751   : > { %v2386_v44 = vpop.f32.mrf.mxu1 }
 0x752   : > { %v2956_v46 = vadd.f32 %v1747_v43, %v2705_v7 }
 0x753   : > { %v1749_v47 = vpop.f32.mrf.mxu1 }
 0x754   : > { %v1750_v50 = vadd.f32 %v2199_v42, %v1749_v47  ;;  %v1757_v51 = vsel %vm629_vm3, %v2956_v46, 0.0 }
 0x755   : > { %1758 = vadd.xlane.f32.xlu1 %v1757_v51  ;;  %v2387_v54 = vpop.f32.mrf.mxu1 }
 0x756   : > { %v2961_v55 = vadd.f32 %v1750_v50, %v2710_v8 }
 0x758   : > { %v1760_v59 = vsel %vm629_vm3, %v2961_v55, 0.0 }
 0x759   : > { %1761 = vadd.xlane.f32.xlu0 %v1760_v59 }
 0x7de   : > { %v1759_v60 = vpop.xlane.xlu1 %1758 }
 0x7df   : > { %v1763_v58 = vmul.f32 0.03125, %v1759_v60 }
 0x7e1   : > { %v1765_v7 = vsub.f32 %v2956_v46, %v1763_v58 }
 0x7e2   : > { %v1762_v63 = vpop.xlane.xlu0 %1761 }
 0x7e3   : > { %v1764_v53 = vmul.f32 0.03125, %v1762_v63  ;;  %v1767_v0 = vmul.f32 %v1765_v7, %v1765_v7 }
 0x7e5   : > { %v1766_v57 = vsub.f32 %v2961_v55, %v1764_v53  ;;  %v1769_v8 = vsel %vm629_vm3, %v1767_v0, 0.0 }
 0x7e6   : > { %1770 = vadd.xlane.f32.xlu0 %v1769_v8 }
 0x7e7   : > { %v1768_v62 = vmul.f32 %v1766_v57, %v1766_v57 }
 0x7e9   : > { %v1772_v1 = vsel %vm629_vm3, %v1768_v62, 0.0 }
 0x7ea   : > { %1773 = vadd.xlane.f32.xlu0 %v1772_v1 }
 0x86f   : > { %v1771_v11 = vpop.xlane.xlu0 %1770 }
 0x870   : > { %v1775_v12 = vmul.f32 0.03125, %v1771_v11 }
 0x872   : > { %v1777_v13 = vadd.f32 1e-05, %v1775_v12 }
 0x873   : > { %v1774_v14 = vpop.xlane.xlu0 %1773 }
 0x874   : > { %2516 = vrsqrt.f32 %v1777_v13  ;;  %v1776_v15 = vmul.f32 0.03125, %v1774_v14 }
 0x876   : > { %v1778_v16 = vadd.f32 1e-05, %v1776_v15 }
 0x878   : > { %2518 = vrsqrt.f32 %v1778_v16 }
 0x881   : > { %v2517_v17 = vpop.eup %2516 }
 0x882   : > { %v1781_v18 = vmul.f32 %v2517_v17, %v1765_v7 }
 0x884   : > { %v1789_v23 = vmul.f32 %v2203_v19, %v1781_v18 }
 0x885   : > { %v2519_v20 = vpop.eup %2518 }
 0x886   : > { %v1782_v21 = vmul.f32 %v2519_v20, %v1766_v57  ;;  %v1797_v26 = vadd.f32 %v2204_v24, %v1789_v23 }
 0x888   : > { %v1790_v25 = vmul.f32 %v2203_v19, %v1782_v21 }
 0x88a   : > { %v1798_v27 = vadd.f32 %v2204_v24, %v1790_v25 }
 0x88c   : > { %v1799_v56 = vpack.c.bf16 %v1798_v27, %v1797_v26 }
 0x88e   : > { %2393 = vmatmul.mubr.msk.bf16.vlgmr.msra.gmra.mxu0 %vm629_vm3, %v1799_v56 }
 0x94e   : > { %v1860_v48 = vpop.f32.mrf.mxu0 }
 0x94f   : > { %v1861_v31 = vadd.f32 %v2205_v49, %v1860_v48 }
 0x950   : > { %v2394_v45 = vpop.f32.mrf.mxu0 }
 0x951   : > { %v1867_v30 = vmax.f32 %v1861_v31, 0.0 }
 0x952   : > { %v1863_v32 = vpop.f32.mrf.mxu0 }
 0x953   : > { %v1864_v33 = vadd.f32 %v2205_v49, %v1863_v32 }
 0x954   : > { %v2395_v34 = vpop.f32.mrf.mxu0 }
 0x955   : > { %v1868_v35 = vmax.f32 %v1864_v33, 0.0 }
 0x957   : > { %v1869_v36 = vpack.c.bf16 %v1868_v35, %v1867_v30 }
 0x959   : > { %2413 = vmatmul.mubr.bf16.vlgmr.msra.gmra.mxu1 %v1869_v36 }
 0xa19   : > { %v1968_v37 = vpop.f32.mrf.mxu1 }
 0xa1a   : > { %v1975_v38 = vadd.f32 %v1968_v37, %v2956_v46 }
 0xa1b   : > { %v2414_v41 = vpop.f32.mrf.mxu1 }
 0xa1c   : > { %v1984_v52 = vadd.f32 %v2217_v22, %v1975_v38 }
 0xa1d   : > { %v1971_v40 = vpop.f32.mrf.mxu1 }
 0xa1e   : > { %1986 = vst.msk [vmem:[%s3039_s12] sm:$0xff] %vm629_vm3, %v1984_v52  ;;  %v1976_v42 = vadd.f32 %v1971_v40, %v2961_v55 }
 0xa1f   : > { %v2415_v39 = vpop.f32.mrf.mxu1 }
 0xa20   : > { %v1985_v43 = vadd.f32 %v2217_v22, %v1976_v42 }
 0xa22   : > { %1987 = vst.msk [vmem:[%s3039_s12 + $0x8] sm:$0xff] %vm629_vm3, %v1985_v43 }
 0xa23 PF: > { %s3056_s5 = sld [smem:[#allocation4_spill]] }
 0xa24   : > { %s3057_s21 = sld [smem:[#allocation3_spill]] }
 0xa25   : > { %s3058_s22 = sld [smem:[#allocation5_spill]] }
 0xa29   : > { %s22_s23 = sadd.s32 1, %s3056_s5  }
 0xa2a   : > { %p19_p6 = scmp.ge.s32.totalorder %s22_s23, 4  }
 0xa2c   :  { %21 = sbr.rel (!%p19_p6) target bundleno = 4 (0x4), region = 135 }

</bundles_post_ra>
